<compile_context>
chip_gen: v7x
topology: tpu7x:2x2x1
jax: 0.10.0
libtpu: 0.0.40
codegen_flags: <defaults>
</compile_context>

<pallas_src>
import functools

import jax
import jax.numpy as jnp
from jax import lax
from jax.experimental import pallas as pl
from jax.experimental.pallas import tpu as pltpu


# ----------------------------------------------------------------------------
# Kernel: one batch element per grid step; all heads processed in VMEM.
#   x_ref    : (N, dim)        input tokens for batch b
#   wqkv_ref : (dim, 3*H*dh)   fused QKV weight (VMEM-resident, fetched once)
#   wo_ref   : (H*dh, dim)     to_out weight     (VMEM-resident, fetched once)
#   bo_ref   : (1, dim)        to_out bias (f32)
#   out_ref  : (N, dim)        final output for batch b
# ----------------------------------------------------------------------------
def _attention_kernel(x_ref, wqkv_ref, wo_ref, bo_ref, out_ref, *,
                      heads, dim_head, scale, approx_recip):
    inner = heads * dim_head
    cdt = wqkv_ref.dtype          # matmul-operand dtype (bf16 in production)

    x = x_ref[...]                                                     # (N, dim)

    # Single fused QKV projection (to_qkv has no bias), f32 accumulation.
    qkv = jnp.dot(x, wqkv_ref[...],
                  preferred_element_type=jnp.float32)                  # (N, 3*inner)

    out_heads = []
    for h in range(heads):        # compile-time constant -> fully unrolled
        q = (qkv[:, h * dim_head:(h + 1) * dim_head] * scale).astype(cdt)
        k = qkv[:, inner + h * dim_head: inner + (h + 1) * dim_head].astype(cdt)
        v = qkv[:, 2 * inner + h * dim_head: 2 * inner + (h + 1) * dim_head].astype(cdt)

        # q @ k^T without materializing k.T: contract last axes on the MXU.
        dots = lax.dot_general(q, k, (((1,), (1,)), ((), ())),
                               preferred_element_type=jnp.float32)     # (N, N)

        # Numerically stable softmax, kept in f32.
        dots = dots - jnp.max(dots, axis=-1, keepdims=True)
        e = jnp.exp(dots)
        denom = jnp.sum(e, axis=-1, keepdims=True)
        attn = e * pl.reciprocal(denom, approx=approx_recip)           # EUP slot
        # Dropout(p=0.0) == identity -- nothing to do.

        out_heads.append(jnp.dot(attn.astype(cdt), v,
                                 preferred_element_type=jnp.float32))  # (N, dh)

    out_cat = jnp.concatenate(out_heads, axis=-1)                      # (N, inner)

    # Single fused output projection + bias (bias stays f32).
    proj = jnp.dot(out_cat.astype(cdt), wo_ref[...],
                   preferred_element_type=jnp.float32) + bo_ref[...]
    out_ref[...] = proj.astype(out_ref.dtype)


def attention_forward(x, wqkv, wo, bo, *, heads, dim_head,
                      compute_dtype=jnp.bfloat16, approx_recip=True):
    """x: (B, N, dim); wqkv: (dim, 3*H*dh); wo: (H*dh, dim); bo: (dim,)."""
    B, N, dim = x.shape
    inner = heads * dim_head
    assert wqkv.shape == (dim, 3 * inner) and wo.shape == (inner, dim)
    scale = dim_head ** (-0.5)

    # Matmul operands in bf16 (halves HBM/VMEM traffic; bf16-native MXU on
    # v6e/v7x); all accumulation stays f32 inside the kernel.
    x_c = x.astype(compute_dtype)
    wqkv_c = wqkv.astype(compute_dtype)
    wo_c = wo.astype(compute_dtype)
    bo2 = bo.reshape(1, dim).astype(jnp.float32)

    kernel = functools.partial(_attention_kernel, heads=heads,
                               dim_head=dim_head, scale=scale,
                               approx_recip=approx_recip)

    return pl.pallas_call(
        kernel,
        out_shape=jax.ShapeDtypeStruct((B, N, dim), x.dtype),
        grid_spec=pltpu.PrefetchScalarGridSpec(
            num_scalar_prefetch=0,
            grid=(B,),                                   # one step per batch element
            in_specs=[
                # x / out index only on b; weights have constant index maps ->
                # DMA'd once and VMEM-resident across the whole grid.
                pl.BlockSpec((None, N, dim), lambda b: (b, 0, 0)),     # x[b]
                pl.BlockSpec((dim, 3 * inner), lambda b: (0, 0)),      # Wqkv
                pl.BlockSpec((inner, dim), lambda b: (0, 0)),          # Wo
                pl.BlockSpec((1, dim), lambda b: (0, 0)),              # to_out bias
            ],
            out_specs=pl.BlockSpec((None, N, dim), lambda b: (b, 0, 0)),
        ),
        compiler_params=pltpu.CompilerParams(
            dimension_semantics=("parallel",),           # B>=2 -> both v7x TCs used
            vmem_limit_bytes=32 * 1024 * 1024,           # explicit budget (v7x: 64 MiB phys)
        ),
    )(x_c, wqkv_c, wo_c, bo2)


def reference_forward(x, wqkv, wo, bo, *, heads, dim_head):
    """Pure-JAX f32 reference mirroring the PyTorch forward."""
    B, N, dim = x.shape
    inner = heads * dim_head
    scale = dim_head ** (-0.5)

    qkv = jnp.einsum("bnd,df->bnf", x, wqkv, precision="highest")
    q, k, v = jnp.split(qkv, 3, axis=-1)

    def split_heads(t):  # 'b n (h d) -> b h n d'
        return t.reshape(B, N, heads, dim_head).transpose(0, 2, 1, 3)

    q, k, v = split_heads(q), split_heads(k), split_heads(v)
    dots = jnp.einsum("bhnd,bhmd->bhnm", q, k, precision="highest") * scale
    attn = jax.nn.softmax(dots, axis=-1)
    out = jnp.einsum("bhnm,bhmd->bhnd", attn, v, precision="highest")
    out = out.transpose(0, 2, 1, 3).reshape(B, N, inner)   # 'b h n d -> b n (h d)'
    return jnp.einsum("bnf,fd->bnd", out, wo, precision="highest") + bo


if __name__ == "__main__":
    # Small deterministic shapes consistent with the module defaults.
    B, N = 2, 8                      # batch, sequence length
    dim = 128                        # token dim (multiple of 128 -> lane-dense out)
    heads, dim_head = 8, 64          # module defaults -> inner_dim = 512
    inner = heads * dim_head         # project_out == True (heads != 1)

    key = jax.random.PRNGKey(0)
    kx, kqkv, kwo, kbo = jax.random.split(key, 4)

    x = jax.random.normal(kx, (B, N, dim), dtype=jnp.float32)
    # to_qkv: Linear(dim, 3*inner, bias=False)  (math layout: x @ W)
    wqkv = jax.random.normal(kqkv, (dim, 3 * inner), dtype=jnp.float32) * (dim ** -0.5)
    # to_out: Linear(inner, dim) with bias
    wo = jax.random.normal(kwo, (inner, dim), dtype=jnp.float32) * (inner ** -0.5)
    bo = jax.random.normal(kbo, (dim,), dtype=jnp.float32) * 0.1

    ref = reference_forward(x, wqkv, wo, bo, heads=heads, dim_head=dim_head)

    # 1) Validation pass: f32 operands + exact reciprocal, tight tolerance.
    out_f32 = attention_forward(x, wqkv, wo, bo, heads=heads, dim_head=dim_head,
                                compute_dtype=jnp.float32, approx_recip=False)
    out_f32 = jax.block_until_ready(out_f32)
    assert out_f32.shape == (B, N, dim)
    assert jnp.allclose(out_f32, ref, atol=2e-3, rtol=2e-3), "f32 path mismatch"

    # 2) Production pass: bf16 matmul operands (f32 accumulation) + EUP reciprocal.
    out_bf16 = attention_forward(x, wqkv, wo, bo, heads=heads, dim_head=dim_head,
                                 compute_dtype=jnp.bfloat16, approx_recip=True)
    out_bf16 = jax.block_until_ready(out_bf16)
    assert out_bf16.shape == (B, N, dim)
    assert jnp.allclose(out_bf16, ref, atol=5e-2, rtol=5e-2), "bf16 path mismatch"

    print("KERNEL_OK")
</pallas_src>

<mosaic_0001>
module attributes {stable_mosaic.version = 11 : i64} {
  func.func @_attention_kernel(%arg0: i32, %arg1: memref<1x8x128xf32, #tpu.memory_space<vmem>>, %arg2: memref<128x1536xf32, #tpu.memory_space<vmem>>, %arg3: memref<512x128xf32, #tpu.memory_space<vmem>>, %arg4: memref<1x128xf32, #tpu.memory_space<vmem>>, %arg5: memref<1x8x128xf32, #tpu.memory_space<vmem>>) attributes {dimension_semantics = [#tpu.dimension_semantics<parallel>], iteration_bounds = array<i64: 2>, scalar_prefetch = 0 : i64, scratch_operands = 0 : i64, tpu.core_type = #tpu.core_type<tc>, window_params = [{transform_indices = @transform_0, window_bounds = array<i64: 1, 8, 128>}, {pipeline_mode = #tpu.pipeline_mode<synchronous>, transform_indices = @transform_1, window_bounds = array<i64: 128, 1536>}, {pipeline_mode = #tpu.pipeline_mode<synchronous>, transform_indices = @transform_2, window_bounds = array<i64: 512, 128>}, {pipeline_mode = #tpu.pipeline_mode<synchronous>, transform_indices = @transform_3, window_bounds = array<i64: 1, 128>}, {transform_indices = @transform_4, window_bounds = array<i64: 1, 8, 128>}]} {
    %c0 = arith.constant 0 : index
    %c0_0 = arith.constant 0 : index
    %c0_1 = arith.constant 0 : index
    %0 = vector.load %arg1[%c0, %c0_0, %c0_1] : memref<1x8x128xf32, #tpu.memory_space<vmem>>, vector<1x8x128xf32>
    %1 = vector.shape_cast %0 : vector<1x8x128xf32> to vector<8x128xf32>
    %c0_2 = arith.constant 0 : index
    %c0_3 = arith.constant 0 : index
    %2 = vector.load %arg2[%c0_2, %c0_3] : memref<128x1536xf32, #tpu.memory_space<vmem>>, vector<128x1536xf32>
    %cst = arith.constant dense<0.000000e+00> : vector<8x1536xf32>
    %3 = tpu.matmul %1, %2, %cst {dimension_numbers = #tpu.dot_dimension_numbers<[1], [0], [0], [1], [0, 0, 1, 1], [], []>} : vector<8x128xf32>, vector<128x1536xf32>, vector<8x1536xf32> -> vector<8x1536xf32>
    %4 = vector.extract_strided_slice %3 {offsets = [0, 0], sizes = [8, 64], strides = [1, 1]} : vector<8x1536xf32> to vector<8x64xf32>
    %cst_4 = arith.constant 1.250000e-01 : f32
    %5 = vector.broadcast %cst_4 : f32 to vector<8x64xf32>
    %6 = arith.mulf %4, %5 : vector<8x64xf32>
    %7 = vector.extract_strided_slice %3 {offsets = [0, 512], sizes = [8, 64], strides = [1, 1]} : vector<8x1536xf32> to vector<8x64xf32>
    %8 = vector.extract_strided_slice %3 {offsets = [0, 1024], sizes = [8, 64], strides = [1, 1]} : vector<8x1536xf32> to vector<8x64xf32>
    %cst_5 = arith.constant dense<0.000000e+00> : vector<8x8xf32>
    %9 = tpu.matmul %6, %7, %cst_5 {dimension_numbers = #tpu.dot_dimension_numbers<[1], [1], [0], [0], [0, 0, 1, 0], [], []>} : vector<8x64xf32>, vector<8x64xf32>, vector<8x8xf32> -> vector<8x8xf32>
    %cst_6 = arith.constant dense<0xFF800000> : vector<8xf32>
    %10 = vector.multi_reduction <maximumf>, %9, %cst_6 [1] : vector<8x8xf32> to vector<8xf32>
    %11 = vector.shape_cast %10 : vector<8xf32> to vector<8x1xf32>
    %12 = vector.broadcast %11 : vector<8x1xf32> to vector<8x8xf32>
    %13 = arith.subf %9, %12 : vector<8x8xf32>
    %14 = math.exp %13 : vector<8x8xf32>
    %cst_7 = arith.constant dense<0.000000e+00> : vector<8xf32>
    %15 = vector.multi_reduction <add>, %14, %cst_7 [1] : vector<8x8xf32> to vector<8xf32>
    %16 = vector.shape_cast %15 : vector<8xf32> to vector<8x1xf32>
    %17 = tpu.reciprocal %16 : vector<8x1xf32> -> vector<8x1xf32>
    %18 = vector.broadcast %17 : vector<8x1xf32> to vector<8x8xf32>
    %19 = arith.mulf %14, %18 : vector<8x8xf32>
    %cst_8 = arith.constant dense<0.000000e+00> : vector<8x64xf32>
    %20 = tpu.matmul %19, %8, %cst_8 {dimension_numbers = #tpu.dot_dimension_numbers<[1], [0], [0], [1], [0, 0, 1, 1], [], []>} : vector<8x8xf32>, vector<8x64xf32>, vector<8x64xf32> -> vector<8x64xf32>
    %21 = vector.extract_strided_slice %3 {offsets = [0, 64], sizes = [8, 64], strides = [1, 1]} : vector<8x1536xf32> to vector<8x64xf32>
    %cst_9 = arith.constant 1.250000e-01 : f32
    %22 = vector.broadcast %cst_9 : f32 to vector<8x64xf32>
    %23 = arith.mulf %21, %22 : vector<8x64xf32>
    %24 = vector.extract_strided_slice %3 {offsets = [0, 576], sizes = [8, 64], strides = [1, 1]} : vector<8x1536xf32> to vector<8x64xf32>
    %25 = vector.extract_strided_slice %3 {offsets = [0, 1088], sizes = [8, 64], strides = [1, 1]} : vector<8x1536xf32> to vector<8x64xf32>
    %cst_10 = arith.constant dense<0.000000e+00> : vector<8x8xf32>
    %26 = tpu.matmul %23, %24, %cst_10 {dimension_numbers = #tpu.dot_dimension_numbers<[1], [1], [0], [0], [0, 0, 1, 0], [], []>} : vector<8x64xf32>, vector<8x64xf32>, vector<8x8xf32> -> vector<8x8xf32>
    %cst_11 = arith.constant dense<0xFF800000> : vector<8xf32>
    %27 = vector.multi_reduction <maximumf>, %26, %cst_11 [1] : vector<8x8xf32> to vector<8xf32>
    %28 = vector.shape_cast %27 : vector<8xf32> to vector<8x1xf32>
    %29 = vector.broadcast %28 : vector<8x1xf32> to vector<8x8xf32>
    %30 = arith.subf %26, %29 : vector<8x8xf32>
    %31 = math.exp %30 : vector<8x8xf32>
    %cst_12 = arith.constant dense<0.000000e+00> : vector<8xf32>
    %32 = vector.multi_reduction <add>, %31, %cst_12 [1] : vector<8x8xf32> to vector<8xf32>
    %33 = vector.shape_cast %32 : vector<8xf32> to vector<8x1xf32>
    %34 = tpu.reciprocal %33 : vector<8x1xf32> -> vector<8x1xf32>
    %35 = vector.broadcast %34 : vector<8x1xf32> to vector<8x8xf32>
    %36 = arith.mulf %31, %35 : vector<8x8xf32>
    %cst_13 = arith.constant dense<0.000000e+00> : vector<8x64xf32>
    %37 = tpu.matmul %36, %25, %cst_13 {dimension_numbers = #tpu.dot_dimension_numbers<[1], [0], [0], [1], [0, 0, 1, 1], [], []>} : vector<8x8xf32>, vector<8x64xf32>, vector<8x64xf32> -> vector<8x64xf32>
    %38 = vector.extract_strided_slice %3 {offsets = [0, 128], sizes = [8, 64], strides = [1, 1]} : vector<8x1536xf32> to vector<8x64xf32>
    %cst_14 = arith.constant 1.250000e-01 : f32
    %39 = vector.broadcast %cst_14 : f32 to vector<8x64xf32>
    %40 = arith.mulf %38, %39 : vector<8x64xf32>
    %41 = vector.extract_strided_slice %3 {offsets = [0, 640], sizes = [8, 64], strides = [1, 1]} : vector<8x1536xf32> to vector<8x64xf32>
    %42 = vector.extract_strided_slice %3 {offsets = [0, 1152], sizes = [8, 64], strides = [1, 1]} : vector<8x1536xf32> to vector<8x64xf32>
    %cst_15 = arith.constant dense<0.000000e+00> : vector<8x8xf32>
    %43 = tpu.matmul %40, %41, %cst_15 {dimension_numbers = #tpu.dot_dimension_numbers<[1], [1], [0], [0], [0, 0, 1, 0], [], []>} : vector<8x64xf32>, vector<8x64xf32>, vector<8x8xf32> -> vector<8x8xf32>
    %cst_16 = arith.constant dense<0xFF800000> : vector<8xf32>
    %44 = vector.multi_reduction <maximumf>, %43, %cst_16 [1] : vector<8x8xf32> to vector<8xf32>
    %45 = vector.shape_cast %44 : vector<8xf32> to vector<8x1xf32>
    %46 = vector.broadcast %45 : vector<8x1xf32> to vector<8x8xf32>
    %47 = arith.subf %43, %46 : vector<8x8xf32>
    %48 = math.exp %47 : vector<8x8xf32>
    %cst_17 = arith.constant dense<0.000000e+00> : vector<8xf32>
    %49 = vector.multi_reduction <add>, %48, %cst_17 [1] : vector<8x8xf32> to vector<8xf32>
    %50 = vector.shape_cast %49 : vector<8xf32> to vector<8x1xf32>
    %51 = tpu.reciprocal %50 : vector<8x1xf32> -> vector<8x1xf32>
    %52 = vector.broadcast %51 : vector<8x1xf32> to vector<8x8xf32>
    %53 = arith.mulf %48, %52 : vector<8x8xf32>
    %cst_18 = arith.constant dense<0.000000e+00> : vector<8x64xf32>
    %54 = tpu.matmul %53, %42, %cst_18 {dimension_numbers = #tpu.dot_dimension_numbers<[1], [0], [0], [1], [0, 0, 1, 1], [], []>} : vector<8x8xf32>, vector<8x64xf32>, vector<8x64xf32> -> vector<8x64xf32>
    %55 = vector.extract_strided_slice %3 {offsets = [0, 192], sizes = [8, 64], strides = [1, 1]} : vector<8x1536xf32> to vector<8x64xf32>
    %cst_19 = arith.constant 1.250000e-01 : f32
    %56 = vector.broadcast %cst_19 : f32 to vector<8x64xf32>
    %57 = arith.mulf %55, %56 : vector<8x64xf32>
    %58 = vector.extract_strided_slice %3 {offsets = [0, 704], sizes = [8, 64], strides = [1, 1]} : vector<8x1536xf32> to vector<8x64xf32>
    %59 = vector.extract_strided_slice %3 {offsets = [0, 1216], sizes = [8, 64], strides = [1, 1]} : vector<8x1536xf32> to vector<8x64xf32>
    %cst_20 = arith.constant dense<0.000000e+00> : vector<8x8xf32>
    %60 = tpu.matmul %57, %58, %cst_20 {dimension_numbers = #tpu.dot_dimension_numbers<[1], [1], [0], [0], [0, 0, 1, 0], [], []>} : vector<8x64xf32>, vector<8x64xf32>, vector<8x8xf32> -> vector<8x8xf32>
    %cst_21 = arith.constant dense<0xFF800000> : vector<8xf32>
    %61 = vector.multi_reduction <maximumf>, %60, %cst_21 [1] : vector<8x8xf32> to vector<8xf32>
    %62 = vector.shape_cast %61 : vector<8xf32> to vector<8x1xf32>
    %63 = vector.broadcast %62 : vector<8x1xf32> to vector<8x8xf32>
    %64 = arith.subf %60, %63 : vector<8x8xf32>
    %65 = math.exp %64 : vector<8x8xf32>
    %cst_22 = arith.constant dense<0.000000e+00> : vector<8xf32>
    %66 = vector.multi_reduction <add>, %65, %cst_22 [1] : vector<8x8xf32> to vector<8xf32>
    %67 = vector.shape_cast %66 : vector<8xf32> to vector<8x1xf32>
    %68 = tpu.reciprocal %67 : vector<8x1xf32> -> vector<8x1xf32>
    %69 = vector.broadcast %68 : vector<8x1xf32> to vector<8x8xf32>
    %70 = arith.mulf %65, %69 : vector<8x8xf32>
    %cst_23 = arith.constant dense<0.000000e+00> : vector<8x64xf32>
    %71 = tpu.matmul %70, %59, %cst_23 {dimension_numbers = #tpu.dot_dimension_numbers<[1], [0], [0], [1], [0, 0, 1, 1], [], []>} : vector<8x8xf32>, vector<8x64xf32>, vector<8x64xf32> -> vector<8x64xf32>
    %72 = vector.extract_strided_slice %3 {offsets = [0, 256], sizes = [8, 64], strides = [1, 1]} : vector<8x1536xf32> to vector<8x64xf32>
    %cst_24 = arith.constant 1.250000e-01 : f32
    %73 = vector.broadcast %cst_24 : f32 to vector<8x64xf32>
    %74 = arith.mulf %72, %73 : vector<8x64xf32>
    %75 = vector.extract_strided_slice %3 {offsets = [0, 768], sizes = [8, 64], strides = [1, 1]} : vector<8x1536xf32> to vector<8x64xf32>
    %76 = vector.extract_strided_slice %3 {offsets = [0, 1280], sizes = [8, 64], strides = [1, 1]} : vector<8x1536xf32> to vector<8x64xf32>
    %cst_25 = arith.constant dense<0.000000e+00> : vector<8x8xf32>
    %77 = tpu.matmul %74, %75, %cst_25 {dimension_numbers = #tpu.dot_dimension_numbers<[1], [1], [0], [0], [0, 0, 1, 0], [], []>} : vector<8x64xf32>, vector<8x64xf32>, vector<8x8xf32> -> vector<8x8xf32>
    %cst_26 = arith.constant dense<0xFF800000> : vector<8xf32>
    %78 = vector.multi_reduction <maximumf>, %77, %cst_26 [1] : vector<8x8xf32> to vector<8xf32>
    %79 = vector.shape_cast %78 : vector<8xf32> to vector<8x1xf32>
    %80 = vector.broadcast %79 : vector<8x1xf32> to vector<8x8xf32>
    %81 = arith.subf %77, %80 : vector<8x8xf32>
    %82 = math.exp %81 : vector<8x8xf32>
    %cst_27 = arith.constant dense<0.000000e+00> : vector<8xf32>
    %83 = vector.multi_reduction <add>, %82, %cst_27 [1] : vector<8x8xf32> to vector<8xf32>
    %84 = vector.shape_cast %83 : vector<8xf32> to vector<8x1xf32>
    %85 = tpu.reciprocal %84 : vector<8x1xf32> -> vector<8x1xf32>
    %86 = vector.broadcast %85 : vector<8x1xf32> to vector<8x8xf32>
    %87 = arith.mulf %82, %86 : vector<8x8xf32>
    %cst_28 = arith.constant dense<0.000000e+00> : vector<8x64xf32>
    %88 = tpu.matmul %87, %76, %cst_28 {dimension_numbers = #tpu.dot_dimension_numbers<[1], [0], [0], [1], [0, 0, 1, 1], [], []>} : vector<8x8xf32>, vector<8x64xf32>, vector<8x64xf32> -> vector<8x64xf32>
    %89 = vector.extract_strided_slice %3 {offsets = [0, 320], sizes = [8, 64], strides = [1, 1]} : vector<8x1536xf32> to vector<8x64xf32>
    %cst_29 = arith.constant 1.250000e-01 : f32
    %90 = vector.broadcast %cst_29 : f32 to vector<8x64xf32>
    %91 = arith.mulf %89, %90 : vector<8x64xf32>
    %92 = vector.extract_strided_slice %3 {offsets = [0, 832], sizes = [8, 64], strides = [1, 1]} : vector<8x1536xf32> to vector<8x64xf32>
    %93 = vector.extract_strided_slice %3 {offsets = [0, 1344], sizes = [8, 64], strides = [1, 1]} : vector<8x1536xf32> to vector<8x64xf32>
    %cst_30 = arith.constant dense<0.000000e+00> : vector<8x8xf32>
    %94 = tpu.matmul %91, %92, %cst_30 {dimension_numbers = #tpu.dot_dimension_numbers<[1], [1], [0], [0], [0, 0, 1, 0], [], []>} : vector<8x64xf32>, vector<8x64xf32>, vector<8x8xf32> -> vector<8x8xf32>
    %cst_31 = arith.constant dense<0xFF800000> : vector<8xf32>
    %95 = vector.multi_reduction <maximumf>, %94, %cst_31 [1] : vector<8x8xf32> to vector<8xf32>
    %96 = vector.shape_cast %95 : vector<8xf32> to vector<8x1xf32>
    %97 = vector.broadcast %96 : vector<8x1xf32> to vector<8x8xf32>
    %98 = arith.subf %94, %97 : vector<8x8xf32>
    %99 = math.exp %98 : vector<8x8xf32>
    %cst_32 = arith.constant dense<0.000000e+00> : vector<8xf32>
    %100 = vector.multi_reduction <add>, %99, %cst_32 [1] : vector<8x8xf32> to vector<8xf32>
    %101 = vector.shape_cast %100 : vector<8xf32> to vector<8x1xf32>
    %102 = tpu.reciprocal %101 : vector<8x1xf32> -> vector<8x1xf32>
    %103 = vector.broadcast %102 : vector<8x1xf32> to vector<8x8xf32>
    %104 = arith.mulf %99, %103 : vector<8x8xf32>
    %cst_33 = arith.constant dense<0.000000e+00> : vector<8x64xf32>
    %105 = tpu.matmul %104, %93, %cst_33 {dimension_numbers = #tpu.dot_dimension_numbers<[1], [0], [0], [1], [0, 0, 1, 1], [], []>} : vector<8x8xf32>, vector<8x64xf32>, vector<8x64xf32> -> vector<8x64xf32>
    %106 = vector.extract_strided_slice %3 {offsets = [0, 384], sizes = [8, 64], strides = [1, 1]} : vector<8x1536xf32> to vector<8x64xf32>
    %cst_34 = arith.constant 1.250000e-01 : f32
    %107 = vector.broadcast %cst_34 : f32 to vector<8x64xf32>
    %108 = arith.mulf %106, %107 : vector<8x64xf32>
    %109 = vector.extract_strided_slice %3 {offsets = [0, 896], sizes = [8, 64], strides = [1, 1]} : vector<8x1536xf32> to vector<8x64xf32>
    %110 = vector.extract_strided_slice %3 {offsets = [0, 1408], sizes = [8, 64], strides = [1, 1]} : vector<8x1536xf32> to vector<8x64xf32>
    %cst_35 = arith.constant dense<0.000000e+00> : vector<8x8xf32>
    %111 = tpu.matmul %108, %109, %cst_35 {dimension_numbers = #tpu.dot_dimension_numbers<[1], [1], [0], [0], [0, 0, 1, 0], [], []>} : vector<8x64xf32>, vector<8x64xf32>, vector<8x8xf32> -> vector<8x8xf32>
    %cst_36 = arith.constant dense<0xFF800000> : vector<8xf32>
    %112 = vector.multi_reduction <maximumf>, %111, %cst_36 [1] : vector<8x8xf32> to vector<8xf32>
    %113 = vector.shape_cast %112 : vector<8xf32> to vector<8x1xf32>
    %114 = vector.broadcast %113 : vector<8x1xf32> to vector<8x8xf32>
    %115 = arith.subf %111, %114 : vector<8x8xf32>
    %116 = math.exp %115 : vector<8x8xf32>
    %cst_37 = arith.constant dense<0.000000e+00> : vector<8xf32>
    %117 = vector.multi_reduction <add>, %116, %cst_37 [1] : vector<8x8xf32> to vector<8xf32>
    %118 = vector.shape_cast %117 : vector<8xf32> to vector<8x1xf32>
    %119 = tpu.reciprocal %118 : vector<8x1xf32> -> vector<8x1xf32>
    %120 = vector.broadcast %119 : vector<8x1xf32> to vector<8x8xf32>
    %121 = arith.mulf %116, %120 : vector<8x8xf32>
    %cst_38 = arith.constant dense<0.000000e+00> : vector<8x64xf32>
    %122 = tpu.matmul %121, %110, %cst_38 {dimension_numbers = #tpu.dot_dimension_numbers<[1], [0], [0], [1], [0, 0, 1, 1], [], []>} : vector<8x8xf32>, vector<8x64xf32>, vector<8x64xf32> -> vector<8x64xf32>
    %123 = vector.extract_strided_slice %3 {offsets = [0, 448], sizes = [8, 64], strides = [1, 1]} : vector<8x1536xf32> to vector<8x64xf32>
    %cst_39 = arith.constant 1.250000e-01 : f32
    %124 = vector.broadcast %cst_39 : f32 to vector<8x64xf32>
    %125 = arith.mulf %123, %124 : vector<8x64xf32>
    %126 = vector.extract_strided_slice %3 {offsets = [0, 960], sizes = [8, 64], strides = [1, 1]} : vector<8x1536xf32> to vector<8x64xf32>
    %127 = vector.extract_strided_slice %3 {offsets = [0, 1472], sizes = [8, 64], strides = [1, 1]} : vector<8x1536xf32> to vector<8x64xf32>
    %cst_40 = arith.constant dense<0.000000e+00> : vector<8x8xf32>
    %128 = tpu.matmul %125, %126, %cst_40 {dimension_numbers = #tpu.dot_dimension_numbers<[1], [1], [0], [0], [0, 0, 1, 0], [], []>} : vector<8x64xf32>, vector<8x64xf32>, vector<8x8xf32> -> vector<8x8xf32>
    %cst_41 = arith.constant dense<0xFF800000> : vector<8xf32>
    %129 = vector.multi_reduction <maximumf>, %128, %cst_41 [1] : vector<8x8xf32> to vector<8xf32>
    %130 = vector.shape_cast %129 : vector<8xf32> to vector<8x1xf32>
    %131 = vector.broadcast %130 : vector<8x1xf32> to vector<8x8xf32>
    %132 = arith.subf %128, %131 : vector<8x8xf32>
    %133 = math.exp %132 : vector<8x8xf32>
    %cst_42 = arith.constant dense<0.000000e+00> : vector<8xf32>
    %134 = vector.multi_reduction <add>, %133, %cst_42 [1] : vector<8x8xf32> to vector<8xf32>
    %135 = vector.shape_cast %134 : vector<8xf32> to vector<8x1xf32>
    %136 = tpu.reciprocal %135 : vector<8x1xf32> -> vector<8x1xf32>
    %137 = vector.broadcast %136 : vector<8x1xf32> to vector<8x8xf32>
    %138 = arith.mulf %133, %137 : vector<8x8xf32>
    %cst_43 = arith.constant dense<0.000000e+00> : vector<8x64xf32>
    %139 = tpu.matmul %138, %127, %cst_43 {dimension_numbers = #tpu.dot_dimension_numbers<[1], [0], [0], [1], [0, 0, 1, 1], [], []>} : vector<8x8xf32>, vector<8x64xf32>, vector<8x64xf32> -> vector<8x64xf32>
    %140 = tpu.concatenate %20, %37, %54, %71, %88, %105, %122, %139 in 1 : vector<8x64xf32>, vector<8x64xf32>, vector<8x64xf32>, vector<8x64xf32>, vector<8x64xf32>, vector<8x64xf32>, vector<8x64xf32>, vector<8x64xf32> -> vector<8x512xf32>
    %c0_44 = arith.constant 0 : index
    %c0_45 = arith.constant 0 : index
    %141 = vector.load %arg3[%c0_44, %c0_45] : memref<512x128xf32, #tpu.memory_space<vmem>>, vector<512x128xf32>
    %cst_46 = arith.constant dense<0.000000e+00> : vector<8x128xf32>
    %142 = tpu.matmul %140, %141, %cst_46 {dimension_numbers = #tpu.dot_dimension_numbers<[1], [0], [0], [1], [0, 0, 1, 1], [], []>} : vector<8x512xf32>, vector<512x128xf32>, vector<8x128xf32> -> vector<8x128xf32>
    %c0_47 = arith.constant 0 : index
    %c0_48 = arith.constant 0 : index
    %143 = vector.load %arg4[%c0_47, %c0_48] : memref<1x128xf32, #tpu.memory_space<vmem>>, vector<1x128xf32>
    %144 = vector.broadcast %143 : vector<1x128xf32> to vector<8x128xf32>
    %145 = arith.addf %142, %144 : vector<8x128xf32>
    %c0_49 = arith.constant 0 : index
    %c0_50 = arith.constant 0 : index
    %c0_51 = arith.constant 0 : index
    %146 = vector.load %arg5[%c0_49, %c0_50, %c0_51] : memref<1x8x128xf32, #tpu.memory_space<vmem>>, vector<1x8x128xf32>
    %147 = vector.shape_cast %146 : vector<1x8x128xf32> to vector<8x128xf32>
    %148 = vector.shape_cast %145 : vector<8x128xf32> to vector<1x8x128xf32>
    tpu.vector_store %arg5[%c0_49, %c0_50, %c0_51], %148 {strides = array<i32>} : memref<1x8x128xf32, #tpu.memory_space<vmem>>, vector<1x8x128xf32>,
    return
  }
  func.func @transform_0(%arg0: i32) -> (i32, i32, i32) {
    %c0_i32 = arith.constant 0 : i32
    %c0_i32_0 = arith.constant 0 : i32
    %c0_i32_1 = arith.constant 0 : i32
    return %arg0, %c0_i32, %c0_i32_0 : i32, i32, i32
  }
  func.func @transform_1(%arg0: i32) -> (i32, i32) {
    %c0_i32 = arith.constant 0 : i32
    %c0_i32_0 = arith.constant 0 : i32
    %c0_i32_1 = arith.constant 0 : i32
    return %c0_i32, %c0_i32_0 : i32, i32
  }
  func.func @transform_2(%arg0: i32) -> (i32, i32) {
    %c0_i32 = arith.constant 0 : i32
    %c0_i32_0 = arith.constant 0 : i32
    %c0_i32_1 = arith.constant 0 : i32
    return %c0_i32, %c0_i32_0 : i32, i32
  }
  func.func @transform_3(%arg0: i32) -> (i32, i32) {
    %c0_i32 = arith.constant 0 : i32
    %c0_i32_0 = arith.constant 0 : i32
    %c0_i32_1 = arith.constant 0 : i32
    return %c0_i32, %c0_i32_0 : i32, i32
  }
  func.func @transform_4(%arg0: i32) -> (i32, i32, i32) {
    %c0_i32 = arith.constant 0 : i32
    %c0_i32_0 = arith.constant 0 : i32
    %c0_i32_1 = arith.constant 0 : i32
    return %arg0, %c0_i32, %c0_i32_0 : i32, i32, i32
  }
}

</mosaic_0001>

<bundles_post_ra>
// kernel: tpu_custom_call.1
= control target key start
LH: loop header
LB: loop body
LE: loop exit
PB: predicated region body
PF: predicated region fallthrough
CT: control target
= control target key end

     0   :  { %9 = vsyncpa [#allocation3], 0  ;;  %s3708_s0 = inlined_call_operand.hbm [shape: f32[2,8,128], index: 0, kind: input, shape index: {}]   ;;  %s3709_s1 = inlined_call_operand.hbm [shape: f32[128,1536], index: 1, kind: input, shape index: {}]   ;;  %s3710_s2 = inlined_call_operand.hbm [shape: f32[512,128], index: 2, kind: input, shape index: {}]   ;;  %s3711_s3 = inlined_call_operand.vmem [shape: f32[1,128], index: 3, kind: input, shape index: {}]   ;;  %s3712_s4 = inlined_call_operand.hbm [shape: f32[2,8,128], index: 4, kind: output, shape index: {}]  }
   0x1   :  { %11 = vsyncpa [#allocation3 + $0x1], 0 }
   0x2   :  { %12 = vsyncpa [#allocation6], 0 }
   0x3   :  { %13 = vsyncpa [#allocation4], 0 }
   0x4   :  { %15 = vsyncpa [#allocation4 + $0x1], 0  ;;  %s3295_s15 = smov 0   ;;  %s3297_s16 = smov 0  }
   0x5   :  { %s3299_s17 = smov 0   ;;  %s3301_s18 = smov 0  }
   0x6 LB: > { %s3316_s19 = sadd.s32 4294967295, %s3257_s18   ;;  %s2506_s20 = sadd.s32 4294967294, %s3257_s18   ;;  %s3257_s18 = sphi %s3301_s18, %s3732_s18   ;;  %s3253_s17 = sphi %s3299_s17, %s3731_s17   ;;  %s3249_s16 = sphi %s3297_s16, %s3730_s16   ;;  %s3245_s15 = sphi %s3295_s15, %s3729_s15  }
   0x7   : > { %p41_p0 = scmp.ne.s32.totalorder %s3249_s16, %s3245_s15  ;;  %p3713_p1 = scmp.eq.s32.totalorder %s3316_s19, 0 }
   0x8   : > { %p134_p3 = scmp.eq.s32.totalorder %s2506_s20, 1  ;;  %p2507_p5 = scmp.ge.s32.totalorder %s3257_s18, 1 }
   0x9   : > { %p3325_p4 = por %p3713_p1, %p41_p0  ;;  %p141_p7 = scmp.lt.s32.totalorder %s3257_s18, 3 }
   0xa   : > { %p3330_p6 = por %p134_p3, %p41_p0  ;;  %s3259_s24 = smov [#allocation5]  }
   0xb   : > { %s3716_s21 = scalar_select %p3325_p4, 1, 0 }
   0xc   : > { %s3717_s22 = scalar_select %p3330_p6, 1, 0 }
   0xd   : > { %p3335_p8 = pnand %p2507_p5, %p141_p7  ;;  %s153_s25 = sshll.u32 %s3259_s24, 4  ;;  %s3339_s25 = int_to_ptr.vmem [resolvable:$true] %s153_s25 }
   0xe   : > { %s3260_s27 = smov [#allocation7]   ;;  %s3101_s5 = scalar_lea.hbm %s3709_s1, 24576 }
   0xf   : > { %p2997_p9 = pneg %p3335_p8  ;;  %s166_s28 = sshll.u32 %s3260_s27, 4  ;;  %s3350_s28 = int_to_ptr.vmem [resolvable:$true] %s166_s28 }
  0x10   : > { %p3102_p12 = scmp.ne.s32.totalorder %s3709_s1, %s3101_s5  ;;  %p3108_p5 = scmp.lt.u32.totalorder %s3101_s5, %s3709_s1 }
  0x11   : > { %p3346_p11 = pnand %p2997_p9, %p3713_p1 }
  0x13   : > { %p3103_p13 = pneg %p3346_p11 }
  0x15   : > { %p3104_p0 = pnand %p3103_p13, %p3102_p12 }
  0x17   : > { %p3105_p3 = pneg %p3104_p0 }
  0x19   : > { %p3110_p7 = pnand %p3108_p5, %p3105_p3 }
  0x1b   : > { %3113 = shalt.err (!%p3110_p7)
}
  0x1c   : > { %s3114_s10 = scalar_lea.vmem %s3339_s25, 24576  ;;  %p3122_p2 = scmp.lt.s32.totalorder %s3339_s25, %s3339_s25 }
  0x1d   : > { %p3115_p9 = scmp.ne.s32.totalorder %s3339_s25, %s3114_s10  ;;  %p3123_p12 = scmp.lt.s32.totalorder %s3114_s10, %s3114_s10 }
  0x1f   : > { %p3117_p10 = pnand %p3115_p9, %p3103_p13  ;;  %p3124_p0 = por %p3123_p12, %p3122_p2 }
  0x21   : > { %p3118_p1 = pneg %p3117_p10 }
  0x23   : > { %p3125_p6 = pnand %p3124_p0, %p3118_p1 }
  0x25   : > { %3128 = shalt.err (!%p3125_p6)
}
  0x26   : > { %s3261_s11 = smov 1536   ;;  %s3262_s12 = smov 96  }
  0x27   : > { %3000 = dma.hbm_to_vmem [thread:$0]  (!%p3346_p11), %s3709_s1, 24576, %s3339_s25, [#allocation6], %s3261_s11, %s3261_s11, %s3262_s12  }
  0x28   : > { %s3129_s27 = scalar_lea.hbm %s3710_s2, 8192 }
  0x29   : > { %p3130_p2 = scmp.ne.s32.totalorder %s3710_s2, %s3129_s27  ;;  %p3136_p10 = scmp.lt.u32.totalorder %s3129_s27, %s3710_s2 }
  0x2b   : > { %p3132_p1 = pnand %p3130_p2, %p3103_p13 }
  0x2d   : > { %p3133_p6 = pneg %p3132_p1 }
  0x2f   : > { %p3138_p3 = pnand %p3136_p10, %p3133_p6 }
  0x31   : > { %3141 = shalt.err (!%p3138_p3)
}
  0x32   : > { %s3142_s25 = scalar_lea.vmem %s3350_s28, 8192  ;;  %p3150_p12 = scmp.lt.s32.totalorder %s3350_s28, %s3350_s28 }
  0x33   : > { %p3143_p5 = scmp.ne.s32.totalorder %s3350_s28, %s3142_s25  ;;  %p3151_p0 = scmp.lt.s32.totalorder %s3142_s25, %s3142_s25 }
  0x35   : > { %p3145_p7 = pnand %p3143_p5, %p3103_p13  ;;  %p3152_p2 = por %p3151_p0, %p3150_p12 }
  0x37   : > { %p3146_p9 = pneg %p3145_p7 }
  0x39   : > { %p3153_p1 = pnand %p3152_p2, %p3146_p9 }
  0x3b   : > { %3156 = shalt.err (!%p3153_p1)
}
  0x3c   : > { %s3263_s7 = smov 128   ;;  %s3264_s8 = smov 8  }
  0x3d   : > { %3003 = dma.hbm_to_vmem [thread:$0]  (!%p3346_p11), %s3710_s2, 8192, %s3350_s28, [#allocation6], %s3263_s7, %s3263_s7, %s3264_s8  }
  0x3e   : > { %s3405_s11 = sadd.s32 1, %s3257_s18   ;;  %s28_s13 = sadd.s32 1, %s3253_s17 }
  0x3f   : > { %s25_s12 = ssub.s32 %s3257_s18, %s3405_s11  ;;  %p35_p6 = scmp.ne.s32.totalorder %s3253_s17, %s3249_s16 }
  0x40   : > { %p26_p13 = scmp.eq.s32.totalorder %s25_s12, 0  ;;  %p36_p10 = scmp.eq.s32.totalorder %s3257_s18, 0 }
  0x41   : > { %p3720_p5 = scmp.eq.s32.totalorder %s3316_s19, 1  ;;  %p3014_p9 = scmp.lt.s32.totalorder %s3257_s18, 2 }
  0x42   : > { %s3414_s14 = scalar_select %p26_p13, %s3253_s17, %s28_s13  }
  0x43   : > { %p37_p3 = por %p36_p10, %p35_p6  ;;  %p3418_p7 = por %p3720_p5, %p35_p6 }
  0x44   : > { %s183_s26 = sand.u32 1, %s3253_s17   ;;  %s2512_s28 = sshll.u32 %s3257_s18, 7 }
  0x45   : > { %s3721_s20 = scalar_select %p3418_p7, 1, 0 }
  0x46   : > { %s2511_s24 = sshll.u32 %s183_s26, 3  ;;  %s3428_s30 = scalar_lea.hbm %s3708_s0, %s2512_s28 }
  0x47   : > { %s187_s5 = scalar_lea.vmem [#allocation2], %s2511_s24  ;;  %p3432_p11 = pnand %p3014_p9, %p37_p3 }
  0x48   : > { %s194_s6 = sshll.u32 %s187_s5, 4  ;;  %s184_s7 = scalar_lea.sflag [#allocation3], %s183_s26  ;;  %s3430_s6 = int_to_ptr.vmem [resolvable:$true] %s194_s6 }
  0x49   : > { %s3157_s8 = scalar_lea.hbm %s3428_s30, 128  ;;  %p3159_p0 = pneg %p3432_p11 }
  0x4a   : > { %p3158_p12 = scmp.ne.s32.totalorder %s3428_s30, %s3157_s8  ;;  %s3162_s12 = scalar_lea.hbm %s3708_s0, 256 }
  0x4b   : > { %p3163_p13 = scmp.lt.u32.totalorder %s3428_s30, %s3708_s0  ;;  %p3164_p6 = scmp.lt.u32.totalorder %s3162_s12, %s3157_s8 }
  0x4c   : > { %p3160_p2 = pnand %p3159_p0, %p3158_p12  ;;  %p3166_p3 = scmp.lt.u32.totalorder %s3157_s8, %s3428_s30 }
  0x4d   : > { %p3165_p10 = por %p3164_p6, %p3163_p13 }
  0x4e   : > { %p3161_p1 = pneg %p3160_p2 }
  0x4f   : > { %p3167_p5 = por %p3166_p3, %p3165_p10 }
  0x51   : > { %p3168_p9 = pnand %p3167_p5, %p3161_p1 }
  0x53   : > { %3171 = shalt.err (!%p3168_p9)
}
  0x54   : > { %s3172_s26 = scalar_lea.vmem %s3430_s6, 128  ;;  %s3265_s28 = smov [#allocation2]  }
  0x55   : > { %p3173_p12 = scmp.ne.s32.totalorder %s3430_s6, %s3172_s26  ;;  %s3177_s27 = sshll.u32 %s3265_s28, 4  ;;  %s3178_s27 = int_to_ptr.vmem [resolvable:$false] %s3177_s27 }
  0x56   : > { %s3179_s29 = scalar_lea.vmem %s3178_s27, 256  ;;  %p3180_p4 = scmp.lt.s32.totalorder %s3430_s6, %s3178_s27 }
  0x57   : > { %p3175_p2 = pnand %p3173_p12, %p3159_p0  ;;  %p3181_p13 = scmp.lt.s32.totalorder %s3179_s29, %s3172_s26 }
  0x59   : > { %p3176_p7 = pneg %p3175_p2  ;;  %p3182_p6 = por %p3181_p13, %p3180_p4 }
  0x5b   : > { %p3183_p10 = pnand %p3182_p6, %p3176_p7 }
  0x5d   : > { %3186 = shalt.err (!%p3183_p10)
}
  0x5e   : > { %3007 = dma.hbm_to_vmem [thread:$0]  (!%p3432_p11), %s3428_s30, 128, %s3430_s6, %s184_s7  }
  0x5f   : > { %203 = sbr.rel (%p3335_p8) target bundleno = 1627 (0x65b), region = 36  ;;  %s3464_s5 = sand.u32 (!%p3335_p8), 1, %s3249_s16  }
  0x60   : > { %s2514_s8 = sshll.u32 (!%p3335_p8), %s3464_s5, 3  ;;  %s206_s9 = scalar_lea.sflag (!%p3335_p8), [#allocation3], %s3464_s5 }
  0x61   : > { %s3470_s10 = scalar_lea.vmem (!%p3335_p8), [#allocation2], %s2514_s8  ;;  %p3723_p4 = scmp.ne.s32.totalorder (!%p3335_p8), %s3716_s21, 0 }
  0x66   : > { %3232 = dma.done.wait (%p3723_p4), %s206_s9, 128  }
  0x67   : > { %3234 = vsyncadd (%p3723_p4), %s206_s9, 4294967168  ;;  %p3724_p7 = scmp.eq.s32.totalorder %s3316_s19, 0 }
  0x69   : > { %3236 = dma.done.wait (%p3724_p7), [#allocation6], 32768   ;;  %p3725_p8 = pmov %p3724_p7 }
  0x6a   : > { %v3266_v0 = vmov 0.0   ;;  %v244_v1 = vld [vmem:[#allocation5 + $0x8] sm:$0xff]  ;;  %v243_v3 = vld [vmem:[#allocation5] sm:$0xff]  ;;  %v246_v19 = vld [vmem:[#allocation5 + $0x18] sm:$0xff]  ;;  %vm3267_vm0 = vmmov 0   ;;  %vm862_vm1 = vcmask 523264  }
  0x6b   : > { %3238 = vsyncadd (%p3725_p8), [#allocation6], 4294934528  ;;  %499 = vmatprep.mubr.f32.mxu0 %v3266_v0  ;;  %570 = vmatprep.mubr.f32.mxu1 %v3266_v0  ;;  %v256_v2 = vld [vmem:[#allocation5 + $0x68] sm:$0xff]  ;;  %v255_v5 = vld [vmem:[#allocation5 + $0x60] sm:$0xff]  ;;  %s3268_s21 = smov 64   ;;  %vm939_vm2 = vcmask 64512  }
  0x6c   : > { %v2729_v4 = vpack.c.bf16 %v256_v2, %v244_v1  ;;  %v268_v6 = vld [vmem:[#allocation5 + $0xc8] sm:$0xff]  ;;  %v2731_v8 = vpack.c.bf16 %v255_v5, %v243_v3  ;;  %v267_v10 = vld [vmem:[#allocation5 + $0xc0] sm:$0xff]  ;;  %v258_v20 = vld [vmem:[#allocation5 + $0x78] sm:$0xff]  ;;  %s2544_s6 = sshll.u32 %s3316_s19, 7  ;;  %s241_s25 = scalar_lea.vmem [#allocation8], %s2514_s8 }
  0x6d   : > { %v280_v7 = vld [vmem:[#allocation5 + $0x128] sm:$0xff]  ;;  %v279_v11 = vld [vmem:[#allocation5 + $0x120] sm:$0xff]  ;;  %v2761_v22 = vpack.c.bf16 %v258_v20, %v246_v19  ;;  %v245_v23 = vld [vmem:[#allocation5 + $0x10] sm:$0xff]  ;;  %s2417_s7 = sshll.u32 %s241_s25, 4  ;;  %s3664_s24 = scalar_lea.hbm %s3712_s4, %s2544_s6  ;;  %s3666_s7 = int_to_ptr.vmem [resolvable:$true] %s2417_s7 }
  0x6e   : > { %v2733_v9 = vpack.c.bf16 %v280_v7, %v268_v6  ;;  %v292_v12 = vld [vmem:[#allocation5 + $0x188] sm:$0xff]  ;;  %2730 = vmatprep.subr.bf16.mxu0 %v2729_v4  ;;  %v2735_v14 = vpack.c.bf16 %v279_v11, %v267_v10  ;;  %v291_v15 = vld [vmem:[#allocation5 + $0x180] sm:$0xff]  ;;  %v257_v24 = vld [vmem:[#allocation5 + $0x70] sm:$0xff]  ;;  %s2404_s26 = scalar_lea.sflag [#allocation4], %s3464_s5  ;;  %s3187_s28 = scalar_lea.vmem %s3666_s7, 128 }
  0x6f   : > { %v304_v13 = vld [vmem:[#allocation5 + $0x1e8] sm:$0xff]  ;;  %2732 = vmatpush1.bf16.msra.mxu0 %v2731_v8  ;;  %v303_v16 = vld [vmem:[#allocation5 + $0x1e0] sm:$0xff]  ;;  %v2763_v25 = vpack.c.bf16 %v257_v24, %v245_v23  ;;  %2762 = vmatprep.subr.bf16.mxu1 %v2761_v22  ;;  %v270_v27 = vld [vmem:[#allocation5 + $0xd8] sm:$0xff]  ;;  %p3188_p11 = scmp.ne.s32.totalorder %s3666_s7, %s3187_s28  ;;  %p3726_p0 = scmp.ne.s32.totalorder %s3721_s20, 0 }
  0x70   : > { %2734 = vmatprep.subr.bf16.mxu0 %v2733_v9  ;;  %v2737_v17 = vpack.c.bf16 %v304_v13, %v292_v12  ;;  %v316_v18 = vld [vmem:[#allocation5 + $0x248] sm:$0xff]  ;;  %v2739_v26 = vpack.c.bf16 %v303_v16, %v291_v15  ;;  %v282_v28 = vld [vmem:[#allocation5 + $0x138] sm:$0xff]  ;;  %v269_v29 = vld [vmem:[#allocation5 + $0xd0] sm:$0xff]  ;;  %s3269_s19 = smov [#allocation8]  }
  0x71   : > { %v328_v21 = vld [vmem:[#allocation5 + $0x2a8] sm:$0xff]  ;;  %v315_v31 = vld [vmem:[#allocation5 + $0x240] sm:$0xff]  ;;  %2764 = vmatpush1.bf16.msra.mxu1 %v2763_v25  ;;  %v2765_v33 = vpack.c.bf16 %v282_v28, %v270_v27  ;;  %v281_v34 = vld [vmem:[#allocation5 + $0x130] sm:$0xff]  ;;  %p3189_p1 = pnand %p3188_p11, %p3726_p0  ;;  %s3191_s27 = sshll.u32 %s3269_s19, 4  ;;  %s3192_s27 = int_to_ptr.vmem [resolvable:$false] %s3191_s27 }
  0x72   : > { %v2741_v30 = vpack.c.bf16 %v328_v21, %v316_v18  ;;  %v327_v32 = vld [vmem:[#allocation5 + $0x2a0] sm:$0xff]  ;;  %v340_v35 = vld [vmem:[#allocation5 + $0x308] sm:$0xff]  ;;  %v2767_v37 = vpack.c.bf16 %v281_v34, %v269_v29  ;;  %v294_v38 = vld [vmem:[#allocation5 + $0x198] sm:$0xff]  ;;  %s3193_s29 = scalar_lea.vmem %s3192_s27, 256  ;;  %p3194_p5 = scmp.lt.s32.totalorder %s3666_s7, %s3192_s27 }
  0x73   : > { %2736 = vmatpush1.bf16.msra.mxu0 %v2735_v14  ;;  %v352_v36 = vld [vmem:[#allocation5 + $0x368] sm:$0xff]  ;;  %2766 = vmatprep.subr.bf16.mxu1 %v2765_v33  ;;  %v306_v39 = vld [vmem:[#allocation5 + $0x1f8] sm:$0xff]  ;;  %v293_v40 = vld [vmem:[#allocation5 + $0x190] sm:$0xff]  ;;  %v2743_v42 = vpack.c.bf16 %v327_v32, %v315_v31  ;;  %p3190_p3 = pneg %p3189_p1  ;;  %p3195_p9 = scmp.lt.s32.totalorder %s3193_s29, %s3187_s28 }
  0x74   : > { %2738 = vmatprep.subr.bf16.mxu0 %v2737_v17  ;;  %v305_v41 = vld [vmem:[#allocation5 + $0x1f0] sm:$0xff]  ;;  %v339_v43 = vld [vmem:[#allocation5 + $0x300] sm:$0xff]  ;;  %v2769_v45 = vpack.c.bf16 %v306_v39, %v294_v38  ;;  %v2745_v46 = vpack.c.bf16 %v352_v36, %v340_v35  ;;  %v364_v47 = vld [vmem:[#allocation5 + $0x3c8] sm:$0xff] }
  0x75   : > { %v351_v44 = vld [vmem:[#allocation5 + $0x360] sm:$0xff]  ;;  %2768 = vmatpush1.bf16.msra.mxu1 %v2767_v37  ;;  %v2771_v48 = vpack.c.bf16 %v305_v41, %v293_v40  ;;  %v318_v49 = vld [vmem:[#allocation5 + $0x258] sm:$0xff]  ;;  %v376_v51 = vld [vmem:[#allocation5 + $0x428] sm:$0xff]  ;;  %p3196_p12 = por %p3195_p9, %p3194_p5 }
  0x76   : > { %v330_v50 = vld [vmem:[#allocation5 + $0x2b8] sm:$0xff]  ;;  %2770 = vmatprep.subr.bf16.mxu1 %v2769_v45  ;;  %v317_v53 = vld [vmem:[#allocation5 + $0x250] sm:$0xff]  ;;  %v2747_v55 = vpack.c.bf16 %v351_v44, %v339_v43  ;;  %v2749_v58 = vpack.c.bf16 %v376_v51, %v364_v47  ;;  %v363_v59 = vld [vmem:[#allocation5 + $0x3c0] sm:$0xff] }
  0x77   : > { %2740 = vmatpush1.bf16.msra.mxu0 %v2739_v26  ;;  %v2773_v52 = vpack.c.bf16 %v330_v50, %v318_v49  ;;  %v329_v54 = vld [vmem:[#allocation5 + $0x2b0] sm:$0xff]  ;;  %v342_v56 = vld [vmem:[#allocation5 + $0x318] sm:$0xff]  ;;  %v375_v60 = vld [vmem:[#allocation5 + $0x420] sm:$0xff]  ;;  %p3197_p2 = pnand %p3196_p12, %p3190_p3 }
  0x78   : > { %2742 = vmatprep.subr.bf16.mxu0 %v2741_v30  ;;  %v354_v57 = vld [vmem:[#allocation5 + $0x378] sm:$0xff]  ;;  %v388_v61 = vld [vmem:[#allocation5 + $0x488] sm:$0xff]  ;;  %v2775_v62 = vpack.c.bf16 %v329_v54, %v317_v53  ;;  %v341_v2 = vld [vmem:[#allocation5 + $0x310] sm:$0xff]  ;;  %v2751_v6 = vpack.c.bf16 %v375_v60, %v363_v59 }
  0x79   : > { %2772 = vmatpush1.bf16.msra.mxu1 %v2771_v48  ;;  %v400_v63 = vld [vmem:[#allocation5 + $0x4e8] sm:$0xff]  ;;  %v2777_v1 = vpack.c.bf16 %v354_v57, %v342_v56  ;;  %v353_v3 = vld [vmem:[#allocation5 + $0x370] sm:$0xff]  ;;  %v366_v4 = vld [vmem:[#allocation5 + $0x3d8] sm:$0xff] }
  0x7a   : > { %2774 = vmatprep.subr.bf16.mxu1 %v2773_v52  ;;  %v378_v5 = vld [vmem:[#allocation5 + $0x438] sm:$0xff]  ;;  %v2753_v7 = vpack.c.bf16 %v400_v63, %v388_v61  ;;  %v387_v8 = vld [vmem:[#allocation5 + $0x480] sm:$0xff]  ;;  %v412_v10 = vld [vmem:[#allocation5 + $0x548] sm:$0xff]  ;;  %v2779_v11 = vpack.c.bf16 %v353_v3, %v341_v2 }
  0x7b   : > { %2744 = vmatpush1.bf16.msra.mxu0 %v2743_v42  ;;  %v399_v9 = vld [vmem:[#allocation5 + $0x4e0] sm:$0xff]  ;;  %v424_v12 = vld [vmem:[#allocation5 + $0x5a8] sm:$0xff]  ;;  %v2781_v13 = vpack.c.bf16 %v378_v5, %v366_v4  ;;  %v365_v14 = vld [vmem:[#allocation5 + $0x3d0] sm:$0xff] }
  0x7c   : > { %2746 = vmatprep.subr.bf16.mxu0 %v2745_v46  ;;  %v377_v15 = vld [vmem:[#allocation5 + $0x430] sm:$0xff]  ;;  %v390_v16 = vld [vmem:[#allocation5 + $0x498] sm:$0xff]  ;;  %v2755_v18 = vpack.c.bf16 %v399_v9, %v387_v8  ;;  %v2757_v19 = vpack.c.bf16 %v424_v12, %v412_v10  ;;  %v411_v20 = vld [vmem:[#allocation5 + $0x540] sm:$0xff] }
  0x7d   : > { %2776 = vmatpush1.bf16.msra.mxu1 %v2775_v62  ;;  %v402_v17 = vld [vmem:[#allocation5 + $0x4f8] sm:$0xff]  ;;  %v423_v21 = vld [vmem:[#allocation5 + $0x5a0] sm:$0xff]  ;;  %v248_v22 = vld [vmem:[#allocation5 + $0x28] sm:$0xff]  ;;  %v2783_v23 = vpack.c.bf16 %v377_v15, %v365_v14 }
  0x7e   : > { %2778 = vmatprep.subr.bf16.mxu1 %v2777_v1  ;;  %v260_v24 = vld [vmem:[#allocation5 + $0x88] sm:$0xff]  ;;  %v2785_v25 = vpack.c.bf16 %v402_v17, %v390_v16  ;;  %v389_v26 = vld [vmem:[#allocation5 + $0x490] sm:$0xff]  ;;  %v414_v28 = vld [vmem:[#allocation5 + $0x558] sm:$0xff]  ;;  %v2759_v30 = vpack.c.bf16 %v423_v21, %v411_v20 }
  0x7f   : > { %2748 = vmatpush1.bf16.msra.mxu0 %v2747_v55  ;;  %v401_v27 = vld [vmem:[#allocation5 + $0x4f0] sm:$0xff]  ;;  %v426_v29 = vld [vmem:[#allocation5 + $0x5b8] sm:$0xff]  ;;  %v2793_v31 = vpack.c.bf16 %v260_v24, %v248_v22  ;;  %v247_v32 = vld [vmem:[#allocation5 + $0x20] sm:$0xff] }
  0x80   : > { %2750 = vmatprep.subr.bf16.mxu0 %v2749_v58  ;;  %v259_v33 = vld [vmem:[#allocation5 + $0x80] sm:$0xff]  ;;  %v272_v34 = vld [vmem:[#allocation5 + $0xe8] sm:$0xff]  ;;  %v2787_v35 = vpack.c.bf16 %v401_v27, %v389_v26  ;;  %v2789_v37 = vpack.c.bf16 %v426_v29, %v414_v28  ;;  %v413_v38 = vld [vmem:[#allocation5 + $0x550] sm:$0xff] }
  0x81   : > { %2780 = vmatpush1.bf16.msra.mxu1 %v2779_v11  ;;  %v284_v36 = vld [vmem:[#allocation5 + $0x148] sm:$0xff]  ;;  %v425_v39 = vld [vmem:[#allocation5 + $0x5b0] sm:$0xff]  ;;  %v250_v40 = vld [vmem:[#allocation5 + $0x38] sm:$0xff]  ;;  %v2795_v43 = vpack.c.bf16 %v259_v33, %v247_v32 }
  0x82   : > { %2782 = vmatprep.subr.bf16.mxu1 %v2781_v13  ;;  %v262_v41 = vld [vmem:[#allocation5 + $0x98] sm:$0xff]  ;;  %v2797_v44 = vpack.c.bf16 %v284_v36, %v272_v34  ;;  %v271_v45 = vld [vmem:[#allocation5 + $0xe0] sm:$0xff]  ;;  %v296_v47 = vld [vmem:[#allocation5 + $0x1a8] sm:$0xff]  ;;  %v2791_v48 = vpack.c.bf16 %v425_v39, %v413_v38 }
  0x83   : > { %2752 = vmatpush1.bf16.msra.mxu0 %v2751_v6  ;;  %v3483_v42 = vld [vmem:[%s3470_s10] sm:$0xff]  ;;  %v283_v46 = vld [vmem:[#allocation5 + $0x140] sm:$0xff]  ;;  %v308_v49 = vld [vmem:[#allocation5 + $0x208] sm:$0xff]  ;;  %v2825_v50 = vpack.c.bf16 %v262_v41, %v250_v40 }
  0x84   : > { %2754 = vmatprep.subr.bf16.mxu0 %v2753_v7  ;;  %v249_v51 = vld [vmem:[#allocation5 + $0x30] sm:$0xff]  ;;  %v274_v53 = vld [vmem:[#allocation5 + $0xf8] sm:$0xff]  ;;  %v2799_v55 = vpack.c.bf16 %v283_v46, %v271_v45  ;;  %v2801_v56 = vpack.c.bf16 %v308_v49, %v296_v47  ;;  %v295_v57 = vld [vmem:[#allocation5 + $0x1a0] sm:$0xff] }
  0x85   : > { %2784 = vmatpush1.bf16.msra.mxu1 %v2783_v23  ;;  %v261_v52 = vld [vmem:[#allocation5 + $0x90] sm:$0xff]  ;;  %v286_v54 = vld [vmem:[#allocation5 + $0x158] sm:$0xff]  ;;  %v307_v58 = vld [vmem:[#allocation5 + $0x200] sm:$0xff] }
  0x86   : > { %2786 = vmatprep.subr.bf16.mxu1 %v2785_v25  ;;  %v320_v59 = vld [vmem:[#allocation5 + $0x268] sm:$0xff]  ;;  %v2827_v60 = vpack.c.bf16 %v261_v52, %v249_v51  ;;  %v2829_v62 = vpack.c.bf16 %v286_v54, %v274_v53  ;;  %v273_v63 = vld [vmem:[#allocation5 + $0xf0] sm:$0xff]  ;;  %v298_v2 = vld [vmem:[#allocation5 + $0x1b8] sm:$0xff]  ;;  %v2803_v4 = vpack.c.bf16 %v307_v58, %v295_v57 }
  0x87   : > { %2756 = vmatpush1.bf16.msra.mxu0 %v2755_v18  ;;  %v332_v61 = vld [vmem:[#allocation5 + $0x2c8] sm:$0xff]  ;;  %v285_v1 = vld [vmem:[#allocation5 + $0x150] sm:$0xff]  ;;  %v310_v3 = vld [vmem:[#allocation5 + $0x218] sm:$0xff] }
  0x88   : > { %2758 = vmatprep.subr.bf16.mxu0 %v2757_v19  ;;  %v2805_v5 = vpack.c.bf16 %v332_v61, %v320_v59  ;;  %v319_v6 = vld [vmem:[#allocation5 + $0x260] sm:$0xff]  ;;  %v344_v8 = vld [vmem:[#allocation5 + $0x328] sm:$0xff]  ;;  %v2831_v9 = vpack.c.bf16 %v285_v1, %v273_v63  ;;  %v2833_v11 = vpack.c.bf16 %v310_v3, %v298_v2  ;;  %v297_v12 = vld [vmem:[#allocation5 + $0x1b0] sm:$0xff] }
  0x89   : > { %2788 = vmatpush1.bf16.msra.mxu1 %v2787_v35  ;;  %v331_v7 = vld [vmem:[#allocation5 + $0x2c0] sm:$0xff]  ;;  %v356_v10 = vld [vmem:[#allocation5 + $0x388] sm:$0xff]  ;;  %v309_v13 = vld [vmem:[#allocation5 + $0x210] sm:$0xff] }
  0x8a   : > { %2790 = vmatprep.subr.bf16.mxu1 %v2789_v37  ;;  %v322_v14 = vld [vmem:[#allocation5 + $0x278] sm:$0xff]  ;;  %v2807_v16 = vpack.c.bf16 %v331_v7, %v319_v6  ;;  %v2809_v17 = vpack.c.bf16 %v356_v10, %v344_v8  ;;  %v343_v18 = vld [vmem:[#allocation5 + $0x320] sm:$0xff]  ;;  %v368_v20 = vld [vmem:[#allocation5 + $0x3e8] sm:$0xff]  ;;  %v2835_v21 = vpack.c.bf16 %v309_v13, %v297_v12 }
  0x8b   : > { %2760 = vmatpush1.bf16.msra.mxu0 %v2759_v30  ;;  %v334_v15 = vld [vmem:[#allocation5 + $0x2d8] sm:$0xff]  ;;  %v355_v19 = vld [vmem:[#allocation5 + $0x380] sm:$0xff]  ;;  %v380_v22 = vld [vmem:[#allocation5 + $0x448] sm:$0xff] }
  0x8c   : > { %2794 = vmatprep.subr.bf16.mxu0 %v2793_v31  ;;  %v2837_v23 = vpack.c.bf16 %v334_v15, %v322_v14  ;;  %v321_v24 = vld [vmem:[#allocation5 + $0x270] sm:$0xff]  ;;  %v346_v26 = vld [vmem:[#allocation5 + $0x338] sm:$0xff]  ;;  %v2811_v28 = vpack.c.bf16 %v355_v19, %v343_v18  ;;  %v2813_v29 = vpack.c.bf16 %v380_v22, %v368_v20  ;;  %v367_v30 = vld [vmem:[#allocation5 + $0x3e0] sm:$0xff] }
  0x8d   : > { %2792 = vmatpush1.bf16.msra.mxu1 %v2791_v48  ;;  %v333_v25 = vld [vmem:[#allocation5 + $0x2d0] sm:$0xff]  ;;  %v358_v27 = vld [vmem:[#allocation5 + $0x398] sm:$0xff]  ;;  %v379_v31 = vld [vmem:[#allocation5 + $0x440] sm:$0xff] }
  0x8e   : > { %500 = vmatmul.mubr.f32.vlgmr.msra.gmra.mrb[0].mxu0 %v3483_v42  ;;  %2826 = vmatprep.subr.bf16.mxu1 %v2825_v50  ;;  %v392_v32 = vld [vmem:[#allocation5 + $0x4a8] sm:$0xff]  ;;  %v2839_v33 = vpack.c.bf16 %v333_v25, %v321_v24  ;;  %v2841_v35 = vpack.c.bf16 %v358_v27, %v346_v26  ;;  %v345_v36 = vld [vmem:[#allocation5 + $0x330] sm:$0xff]  ;;  %v370_v38 = vld [vmem:[#allocation5 + $0x3f8] sm:$0xff]  ;;  %v2815_v40 = vpack.c.bf16 %v379_v31, %v367_v30 }
  0x8f   : > { %2796 = vmatpush1.bf16.msra.mxu0 %v2795_v43  ;;  %641 = vmatprep.mubr.f32.mxu0 %v3266_v0  ;;  %v404_v34 = vld [vmem:[#allocation5 + $0x508] sm:$0xff]  ;;  %v357_v37 = vld [vmem:[#allocation5 + $0x390] sm:$0xff]  ;;  %v382_v39 = vld [vmem:[#allocation5 + $0x458] sm:$0xff] }
  0x90   : > { %2798 = vmatprep.subr.bf16.mxu0 %v2797_v44  ;;  %571 = vmatmul.mubr.f32.vlgmr.msra.gmra.mrb[0].mxu1 %v3483_v42  ;;  %v2817_v41 = vpack.c.bf16 %v404_v34, %v392_v32  ;;  %v391_v43 = vld [vmem:[#allocation5 + $0x4a0] sm:$0xff]  ;;  %v416_v45 = vld [vmem:[#allocation5 + $0x568] sm:$0xff]  ;;  %v2843_v46 = vpack.c.bf16 %v357_v37, %v345_v36  ;;  %v2845_v48 = vpack.c.bf16 %v382_v39, %v370_v38  ;;  %v369_v49 = vld [vmem:[#allocation5 + $0x3f0] sm:$0xff] }
  0x91   : > { %2828 = vmatpush1.bf16.msra.mxu1 %v2827_v60  ;;  %712 = vmatprep.mubr.f32.mxu1 %v3266_v0  ;;  %v403_v44 = vld [vmem:[#allocation5 + $0x500] sm:$0xff]  ;;  %v428_v47 = vld [vmem:[#allocation5 + $0x5c8] sm:$0xff]  ;;  %v381_v50 = vld [vmem:[#allocation5 + $0x450] sm:$0xff] }
  0x92   : > { %2830 = vmatprep.subr.bf16.mxu1 %v2829_v62  ;;  %v394_v51 = vld [vmem:[#allocation5 + $0x4b8] sm:$0xff]  ;;  %v2819_v53 = vpack.c.bf16 %v403_v44, %v391_v43  ;;  %v2821_v54 = vpack.c.bf16 %v428_v47, %v416_v45  ;;  %v2847_v57 = vpack.c.bf16 %v381_v50, %v369_v49  ;;  %v393_v58 = vld [vmem:[#allocation5 + $0x4b0] sm:$0xff]  ;;  %v252_v61 = vld [vmem:[#allocation5 + $0x48] sm:$0xff] }
  0x93   : > { %2800 = vmatpush1.bf16.msra.mxu0 %v2799_v55  ;;  %v406_v52 = vld [vmem:[#allocation5 + $0x518] sm:$0xff]  ;;  %v415_v55 = vld [vmem:[#allocation5 + $0x560] sm:$0xff]  ;;  %v405_v60 = vld [vmem:[#allocation5 + $0x510] sm:$0xff] }
  0x94   : > { %2802 = vmatprep.subr.bf16.mxu0 %v2801_v56  ;;  %v427_v56 = vld [vmem:[#allocation5 + $0x5c0] sm:$0xff]  ;;  %v2849_v59 = vpack.c.bf16 %v406_v52, %v394_v51  ;;  %v264_v62 = vld [vmem:[#allocation5 + $0xa8] sm:$0xff]  ;;  %v418_v63 = vld [vmem:[#allocation5 + $0x578] sm:$0xff]  ;;  %v2851_v3 = vpack.c.bf16 %v405_v60, %v393_v58 }
  0x95   : > { %2832 = vmatpush1.bf16.msra.mxu1 %v2831_v9  ;;  %v430_v1 = vld [vmem:[#allocation5 + $0x5d8] sm:$0xff]  ;;  %v2823_v2 = vpack.c.bf16 %v427_v56, %v415_v55  ;;  %v251_v6 = vld [vmem:[#allocation5 + $0x40] sm:$0xff]  ;;  %v429_v9 = vld [vmem:[#allocation5 + $0x5d0] sm:$0xff] }
  0x96   : > { %2834 = vmatprep.subr.bf16.mxu1 %v2833_v11  ;;  %v263_v7 = vld [vmem:[#allocation5 + $0xa0] sm:$0xff]  ;;  %v2853_v8 = vpack.c.bf16 %v430_v1, %v418_v63  ;;  %v276_v10 = vld [vmem:[#allocation5 + $0x108] sm:$0xff] }
  0x97   : > { %2804 = vmatpush1.bf16.msra.mxu0 %v2803_v4  ;;  %v417_v4 = vld [vmem:[#allocation5 + $0x570] sm:$0xff]  ;;  %v288_v11 = vld [vmem:[#allocation5 + $0x168] sm:$0xff]  ;;  %v2859_v12 = vpack.c.bf16 %v263_v7, %v251_v6  ;;  %v275_v15 = vld [vmem:[#allocation5 + $0x100] sm:$0xff] }
  0x98   : > { %2806 = vmatprep.subr.bf16.mxu0 %v2805_v5  ;;  %v2857_v5 = vpack.c.bf16 %v264_v62, %v252_v61  ;;  %v2855_v13 = vpack.c.bf16 %v429_v9, %v417_v4  ;;  %v2861_v14 = vpack.c.bf16 %v288_v11, %v276_v10  ;;  %v300_v18 = vld [vmem:[#allocation5 + $0x1c8] sm:$0xff]  ;;  %v311_v22 = vld [vmem:[#allocation5 + $0x220] sm:$0xff]  ;;  %v254_v6 = vld [vmem:[#allocation5 + $0x58] sm:$0xff] }
  0x99   : > { %2836 = vmatpush1.bf16.msra.mxu1 %v2835_v21  ;;  %v312_v19 = vld [vmem:[#allocation5 + $0x228] sm:$0xff]  ;;  %v299_v21 = vld [vmem:[#allocation5 + $0x1c0] sm:$0xff]  ;;  %v266_v7 = vld [vmem:[#allocation5 + $0xb8] sm:$0xff] }
  0x9a   : > { %2838 = vmatprep.subr.bf16.mxu1 %v2837_v23  ;;  %v2865_v20 = vpack.c.bf16 %v312_v19, %v300_v18  ;;  %v2867_v23 = vpack.c.bf16 %v311_v22, %v299_v21  ;;  %v324_v24 = vld [vmem:[#allocation5 + $0x288] sm:$0xff]  ;;  %v323_v26 = vld [vmem:[#allocation5 + $0x280] sm:$0xff]  ;;  %v2889_v9 = vpack.c.bf16 %v266_v7, %v254_v6  ;;  %v265_v10 = vld [vmem:[#allocation5 + $0xb0] sm:$0xff] }
  0x9b   : > { %2808 = vmatpush1.bf16.msra.mxu0 %v2807_v16  ;;  %v287_v16 = vld [vmem:[#allocation5 + $0x160] sm:$0xff]  ;;  %v336_v25 = vld [vmem:[#allocation5 + $0x2e8] sm:$0xff]  ;;  %v278_v11 = vld [vmem:[#allocation5 + $0x118] sm:$0xff] }
  0x9c   : > { %2810 = vmatprep.subr.bf16.mxu0 %v2809_v17  ;;  %v2863_v17 = vpack.c.bf16 %v287_v16, %v275_v15  ;;  %v2869_v27 = vpack.c.bf16 %v336_v25, %v324_v24  ;;  %v360_v30 = vld [vmem:[#allocation5 + $0x3a8] sm:$0xff]  ;;  %v359_v34 = vld [vmem:[#allocation5 + $0x3a0] sm:$0xff]  ;;  %v277_v15 = vld [vmem:[#allocation5 + $0x110] sm:$0xff] }
  0x9d   : > { %2840 = vmatpush1.bf16.msra.mxu1 %v2839_v33  ;;  %v347_v33 = vld [vmem:[#allocation5 + $0x340] sm:$0xff]  ;;  %v384_v36 = vld [vmem:[#allocation5 + $0x468] sm:$0xff]  ;;  %v289_v16 = vld [vmem:[#allocation5 + $0x170] sm:$0xff] }
  0x9e   : > { %2842 = vmatprep.subr.bf16.mxu1 %v2841_v35  ;;  %v372_v35 = vld [vmem:[#allocation5 + $0x408] sm:$0xff]  ;;  %v2875_v37 = vpack.c.bf16 %v359_v34, %v347_v33  ;;  %v371_v39 = vld [vmem:[#allocation5 + $0x400] sm:$0xff]  ;;  %v314_v18 = vld [vmem:[#allocation5 + $0x238] sm:$0xff]  ;;  %v2895_v19 = vpack.c.bf16 %v289_v16, %v277_v15 }
  0x9f   : > { %2812 = vmatpush1.bf16.msra.mxu0 %v2811_v28  ;;  %v335_v28 = vld [vmem:[#allocation5 + $0x2e0] sm:$0xff]  ;;  %v2877_v38 = vpack.c.bf16 %v384_v36, %v372_v35  ;;  %v408_v43 = vld [vmem:[#allocation5 + $0x528] sm:$0xff]  ;;  %v301_v21 = vld [vmem:[#allocation5 + $0x1d0] sm:$0xff] }
  0xa0   : > { %2814 = vmatprep.subr.bf16.mxu0 %v2813_v29  ;;  %v348_v29 = vld [vmem:[#allocation5 + $0x348] sm:$0xff]  ;;  %v2871_v31 = vpack.c.bf16 %v335_v28, %v323_v26  ;;  %v407_v47 = vld [vmem:[#allocation5 + $0x520] sm:$0xff]  ;;  %v313_v22 = vld [vmem:[#allocation5 + $0x230] sm:$0xff] }
  0xa1   : > { %2844 = vmatpush1.bf16.msra.mxu1 %v2843_v46  ;;  %v2873_v32 = vpack.c.bf16 %v360_v30, %v348_v29  ;;  %v395_v46 = vld [vmem:[#allocation5 + $0x4c0] sm:$0xff]  ;;  %v432_v49 = vld [vmem:[#allocation5 + $0x5e8] sm:$0xff]  ;;  %v338_v24 = vld [vmem:[#allocation5 + $0x2f8] sm:$0xff]  ;;  %v2899_v25 = vpack.c.bf16 %v313_v22, %v301_v21 }
  0xa2   : > { %2846 = vmatprep.subr.bf16.mxu1 %v2845_v48  ;;  %v420_v48 = vld [vmem:[#allocation5 + $0x588] sm:$0xff]  ;;  %v2883_v50 = vpack.c.bf16 %v407_v47, %v395_v46  ;;  %v419_v52 = vld [vmem:[#allocation5 + $0x580] sm:$0xff]  ;;  %v337_v28 = vld [vmem:[#allocation5 + $0x2f0] sm:$0xff] }
  0xa3   : > { %2816 = vmatpush1.bf16.msra.mxu0 %v2815_v40  ;;  %v383_v40 = vld [vmem:[#allocation5 + $0x460] sm:$0xff]  ;;  %v2885_v51 = vpack.c.bf16 %v432_v49, %v420_v48  ;;  %v350_v29 = vld [vmem:[#allocation5 + $0x358] sm:$0xff]  ;;  %v349_v33 = vld [vmem:[#allocation5 + $0x350] sm:$0xff] }
  0xa4   : > { %2818 = vmatprep.subr.bf16.mxu0 %v2817_v41  ;;  %v396_v41 = vld [vmem:[#allocation5 + $0x4c8] sm:$0xff]  ;;  %v2879_v44 = vpack.c.bf16 %v383_v40, %v371_v39  ;;  %v362_v30 = vld [vmem:[#allocation5 + $0x3b8] sm:$0xff]  ;;  %v361_v34 = vld [vmem:[#allocation5 + $0x3b0] sm:$0xff] }
  0xa5   : > { %2848 = vmatpush1.bf16.msra.mxu1 %v2847_v57  ;;  %v2881_v45 = vpack.c.bf16 %v408_v43, %v396_v41  ;;  %v374_v35 = vld [vmem:[#allocation5 + $0x418] sm:$0xff]  ;;  %v373_v39 = vld [vmem:[#allocation5 + $0x410] sm:$0xff] }
  0xa6   : > { %2850 = vmatprep.subr.bf16.mxu1 %v2849_v59  ;;  %v386_v36 = vld [vmem:[#allocation5 + $0x478] sm:$0xff]  ;;  %v385_v40 = vld [vmem:[#allocation5 + $0x470] sm:$0xff] }
  0xa7   : > { %2820 = vmatpush1.bf16.msra.mxu0 %v2819_v53  ;;  %v431_v53 = vld [vmem:[#allocation5 + $0x5e0] sm:$0xff]  ;;  %v398_v41 = vld [vmem:[#allocation5 + $0x4d8] sm:$0xff]  ;;  %v397_v46 = vld [vmem:[#allocation5 + $0x4d0] sm:$0xff] }
  0xa8   : > { %2822 = vmatprep.subr.bf16.mxu0 %v2821_v54  ;;  %v2887_v54 = vpack.c.bf16 %v431_v53, %v419_v52  ;;  %v410_v43 = vld [vmem:[#allocation5 + $0x538] sm:$0xff]  ;;  %v409_v47 = vld [vmem:[#allocation5 + $0x530] sm:$0xff] }
  0xa9   : > { %2852 = vmatpush1.bf16.msra.mxu1 %v2851_v3  ;;  %v422_v48 = vld [vmem:[#allocation5 + $0x598] sm:$0xff]  ;;  %v421_v53 = vld [vmem:[#allocation5 + $0x590] sm:$0xff] }
  0xaa   : > { %2854 = vmatprep.subr.bf16.mxu1 %v2853_v8  ;;  %v253_v8 = vld [vmem:[#allocation5 + $0x50] sm:$0xff]  ;;  %v434_v49 = vld [vmem:[#allocation5 + $0x5f8] sm:$0xff] }
  0xab   : > { %2824 = vmatpush1.bf16.msra.mxu0 %v2823_v2 }
  0xac   : > { %2858 = vmatprep.subr.bf16.mxu0 %v2857_v5 }
  0xad   : > { %2856 = vmatpush1.bf16.msra.mxu1 %v2855_v13  ;;  %v2891_v13 = vpack.c.bf16 %v265_v10, %v253_v8 }
  0xae   : > { %642 = vmatmul.mubr.f32.vlgmr.msra.gmra.mrb[2].mxu0 %v3483_v42  ;;  %2890 = vmatprep.subr.bf16.mxu1 %v2889_v9 }
  0xaf   : > { %2860 = vmatpush1.bf16.msra.mxu0 %v2859_v12  ;;  %783 = vmatprep.mubr.f32.mxu0 %v3266_v0  ;;  %v290_v12 = vld [vmem:[#allocation5 + $0x178] sm:$0xff] }
  0xb0   : > { %2862 = vmatprep.subr.bf16.mxu0 %v2861_v14  ;;  %713 = vmatmul.mubr.f32.vlgmr.msra.gmra.mrb[2].mxu1 %v3483_v42  ;;  %v2893_v14 = vpack.c.bf16 %v290_v12, %v278_v11 }
  0xb1   : > { %854 = vmatprep.mubr.f32.mxu1 %v3266_v0  ;;  %2892 = vmatpush1.bf16.msra.mxu1 %v2891_v13 }
  0xb2   : > { %2894 = vmatprep.subr.bf16.mxu1 %v2893_v14 }
  0xb3   : > { %2864 = vmatpush1.bf16.msra.mxu0 %v2863_v17  ;;  %v302_v17 = vld [vmem:[#allocation5 + $0x1d8] sm:$0xff] }
  0xb4   : > { %2866 = vmatprep.subr.bf16.mxu0 %v2865_v20  ;;  %v2897_v20 = vpack.c.bf16 %v314_v18, %v302_v17 }
  0xb5   : > { %2896 = vmatpush1.bf16.msra.mxu1 %v2895_v19 }
  0xb6   : > { %2898 = vmatprep.subr.bf16.mxu1 %v2897_v20 }
  0xb7   : > { %2868 = vmatpush1.bf16.msra.mxu0 %v2867_v23  ;;  %v326_v23 = vld [vmem:[#allocation5 + $0x298] sm:$0xff] }
  0xb8   : > { %2870 = vmatprep.subr.bf16.mxu0 %v2869_v27  ;;  %v2901_v26 = vpack.c.bf16 %v338_v24, %v326_v23  ;;  %v325_v27 = vld [vmem:[#allocation5 + $0x290] sm:$0xff] }
  0xb9   : > { %2900 = vmatpush1.bf16.msra.mxu1 %v2899_v25 }
  0xba   : > { %2902 = vmatprep.subr.bf16.mxu1 %v2901_v26 }
  0xbb   : > { %2872 = vmatpush1.bf16.msra.mxu0 %v2871_v31  ;;  %v2903_v31 = vpack.c.bf16 %v337_v28, %v325_v27 }
  0xbc   : > { %2874 = vmatprep.subr.bf16.mxu0 %v2873_v32  ;;  %v2905_v32 = vpack.c.bf16 %v362_v30, %v350_v29 }
  0xbd   : > { %2904 = vmatpush1.bf16.msra.mxu1 %v2903_v31 }
  0xbe   : > { %2906 = vmatprep.subr.bf16.mxu1 %v2905_v32 }
  0xbf   : > { %2876 = vmatpush1.bf16.msra.mxu0 %v2875_v37  ;;  %v2907_v37 = vpack.c.bf16 %v361_v34, %v349_v33 }
  0xc0   : > { %2878 = vmatprep.subr.bf16.mxu0 %v2877_v38  ;;  %v2909_v38 = vpack.c.bf16 %v386_v36, %v374_v35 }
  0xc1   : > { %2908 = vmatpush1.bf16.msra.mxu1 %v2907_v37 }
  0xc2   : > { %2910 = vmatprep.subr.bf16.mxu1 %v2909_v38 }
  0xc3   : > { %2880 = vmatpush1.bf16.msra.mxu0 %v2879_v44  ;;  %v2911_v44 = vpack.c.bf16 %v385_v40, %v373_v39 }
  0xc4   : > { %2882 = vmatprep.subr.bf16.mxu0 %v2881_v45  ;;  %v2913_v45 = vpack.c.bf16 %v410_v43, %v398_v41 }
  0xc5   : > { %2912 = vmatpush1.bf16.msra.mxu1 %v2911_v44 }
  0xc6   : > { %2914 = vmatprep.subr.bf16.mxu1 %v2913_v45 }
  0xc7   : > { %2884 = vmatpush1.bf16.msra.mxu0 %v2883_v50  ;;  %v2915_v50 = vpack.c.bf16 %v409_v47, %v397_v46 }
  0xc8   : > { %2886 = vmatprep.subr.bf16.mxu0 %v2885_v51  ;;  %v2917_v51 = vpack.c.bf16 %v434_v49, %v422_v48 }
  0xc9   : > { %2916 = vmatpush1.bf16.msra.mxu1 %v2915_v50 }
  0xca   : > { %2918 = vmatprep.subr.bf16.mxu1 %v2917_v51 }
  0xcb   : > { %2888 = vmatpush1.bf16.msra.mxu0 %v2887_v54  ;;  %v433_v54 = vld [vmem:[#allocation5 + $0x5f0] sm:$0xff] }
  0xcc   : > { %2649 = vmatprep.subr.mxu0 %v3266_v0 }
  0xce   : > { %784 = vmatmul.mubr.f32.vlgmr.msra.gmra.mrb[4].mxu0 %v3483_v42 }
  0xcf   : > { %2651 = vmatprep.mubr.msk.f32.mxu0 %vm3267_vm0, %v3266_v0 }
 0x161   : > { %v501_v55 = vpop.f32.mrb[0].mxu0 }
 0x162   : > { %v503_v56 = vpop.f32.mrb[1].mxu0  ;;  %v861_v61 = vmul.f32 0.125, %v501_v55  ;;  %v2919_v55 = vpack.c.bf16 %v433_v54, %v421_v53 }
 0x163   : > { %v572_v57 = vpop.f32.mrb[0].mxu1  ;;  %v3504_v62 = vmul.f32 0.125, %v503_v56 }
 0x164   : > { %v574_v58 = vpop.f32.mrb[1].mxu1  ;;  %v3516_v2 = vmul.f32 0.125, %v572_v57  ;;  %2920 = vmatpush1.bf16.msra.mxu1 %v2919_v55 }
 0x165   : > { %v3522_v3 = vmul.f32 0.125, %v574_v58  ;;  %2654 = vmatprep.subr.mxu1 %v3266_v0 }
 0x167   : > { %855 = vmatmul.mubr.f32.vlgmr.msra.gmra.mrb[4].mxu1 %v3483_v42 }
 0x168   : > { %2656 = vmatprep.mubr.msk.f32.mxu1 %vm3267_vm0, %v3266_v0 }
 0x181   : > { %v643_v59 = vpop.f32.mrb[2].mxu0 }
 0x182   : > { %1026 = vrot.lane.b32.xlu0 %v643_v59, %s3268_s21  ;;  %v3498_v60 = vpop.f32.mrb[3].mxu0  ;;  %2650 = vmatpush3.xpose.msk.msra.mxu0 %vm862_vm1, %v643_v59 }
 0x183   : > { %1353 = vrot.lane.b32.xlu1 %v3498_v60, %s3268_s21  ;;  %2659 = vmatprep.subr.mxu0 %v3266_v0  ;;  %v3508_v63 = vpop.f32.mrb[2].mxu1 }
 0x184   : > { %v3514_v1 = vpop.f32.mrb[3].mxu1 }
 0x185   : > { %2652 = vmatmul.mubr.msk.f32.vlgmr.msra.gmra.mrb[6].mxu0 %vm862_vm1, %v861_v61 }
 0x186   : > { %1024 = vrot.lane.b32.xlu0 %v861_v61, %s3268_s21  ;;  %2661 = vmatprep.mubr.msk.f32.mxu0 %vm3267_vm0, %v3266_v0 }
 0x187   : > { %1351 = vrot.lane.b32.xlu1 %v3504_v62, %s3268_s21 }
 0x18a   : > { %1680 = vrot.lane.b32.xlu0 %v3508_v63, %s3268_s21 }
 0x18b   : > { %1678 = vrot.lane.b32.xlu1 %v3516_v2, %s3268_s21 }
 0x18e   : > { %2007 = vrot.lane.b32.xlu0 %v3514_v1, %s3268_s21 }
 0x18f   : > { %2005 = vrot.lane.b32.xlu1 %v3522_v3, %s3268_s21 }
 0x1a1   : > { %v3528_v4 = vpop.f32.mrb[4].mxu0 }
 0x1a2   : > { %v3530_v5 = vpop.f32.mrb[5].mxu0  ;;  %2655 = vmatpush3.msra.mxu1 %v3528_v4 }
 0x1a3   : > { %2664 = vmatprep.subr.mxu1 %v3266_v0 }
 0x1f4   : > { %v1027_v52 = vpop.permute.xlu0 %1026 }
 0x1f5   : > { %2660 = vmatpush3.xpose.msk.msra.mxu0 %vm862_vm1, %v1027_v52  ;;  %v1354_v57 = vpop.permute.xlu1 %1353 }
 0x1f6   : > { %2669 = vmatprep.subr.mxu0 %v3266_v0 }
 0x1f8   : > { %v1025_v56 = vpop.permute.xlu0 %1024 }
 0x1f9   : > { %2662 = vmatmul.mubr.msk.f32.vlgmr.msra.gmra.mrb[8].mxu0 %vm862_vm1, %v1025_v56  ;;  %v1352_v58 = vpop.permute.xlu1 %1351 }
 0x1fa   : > { %2670 = vmatpush3.xpose.msk.msra.mxu0 %vm862_vm1, %v3498_v60  ;;  %2671 = vmatprep.mubr.msk.f32.mxu0 %vm3267_vm0, %v3266_v0 }
 0x1fb   : > { %2679 = vmatprep.subr.mxu0 %v3266_v0 }
 0x1fc   : > { %v1681_v59 = vpop.permute.xlu0 %1680 }
 0x1fd   : > { %2672 = vmatmul.mubr.msk.f32.vlgmr.msra.gmra.mrb[10].mxu0 %vm862_vm1, %v3504_v62  ;;  %v1679_v42 = vpop.permute.xlu1 %1678 }
 0x1fe   : > { %2680 = vmatpush3.xpose.msk.msra.mxu0 %vm862_vm1, %v1354_v57  ;;  %2681 = vmatprep.mubr.msk.f32.mxu0 %vm3267_vm0, %v3266_v0 }
 0x1ff   : > { %2689 = vmatprep.subr.mxu0 %v3266_v0 }
 0x200   : > { %v2008_v60 = vpop.permute.xlu0 %2007 }
 0x201   : > { %2682 = vmatmul.mubr.msk.f32.vlgmr.msra.gmra.mrb[12].mxu0 %vm862_vm1, %v1352_v58  ;;  %v2006_v61 = vpop.permute.xlu1 %2005 }
 0x202   : > { %2690 = vmatpush3.xpose.msk.msra.mxu0 %vm862_vm1, %v3508_v63  ;;  %2691 = vmatprep.mubr.msk.f32.mxu0 %vm3267_vm0, %v3266_v0 }
 0x203   : > { %2699 = vmatprep.subr.mxu0 %v3266_v0 }
 0x205   : > { %2692 = vmatmul.mubr.msk.f32.vlgmr.msra.gmra.mrb[14].mxu0 %vm862_vm1, %v3516_v2 }
 0x206   : > { %2700 = vmatpush3.xpose.msk.msra.mxu0 %vm862_vm1, %v1681_v59  ;;  %2701 = vmatprep.mubr.msk.f32.mxu0 %vm3267_vm0, %v3266_v0 }
 0x207   : > { %2709 = vmatprep.subr.mxu0 %v3266_v0 }
 0x209   : > { %2702 = vmatmul.mubr.msk.f32.vlgmr.msra.gmra.mrb[16].mxu0 %vm862_vm1, %v1679_v42 }
 0x20a   : > { %2710 = vmatpush3.xpose.msk.msra.mxu0 %vm862_vm1, %v3514_v1  ;;  %2711 = vmatprep.mubr.msk.f32.mxu0 %vm3267_vm0, %v3266_v0 }
 0x20b   : > { %2719 = vmatprep.subr.mxu0 %v3266_v0 }
 0x20d   : > { %2712 = vmatmul.mubr.msk.f32.vlgmr.msra.gmra.mrb[18].mxu0 %vm862_vm1, %v3522_v3 }
 0x20e   : > { %2720 = vmatpush3.xpose.msk.msra.mxu0 %vm862_vm1, %v2008_v60  ;;  %2721 = vmatprep.mubr.msk.f32.mxu0 %vm3267_vm0, %v3266_v0 }
 0x211   : > { %2722 = vmatmul.mubr.msk.f32.vlgmr.msra.gmra.mrb[20].mxu0 %vm862_vm1, %v2006_v61 }
 0x23a   : > { %v3587_v30 = vpop.f32.mrb[4].mxu1 }
 0x23b   : > { %v3589_v31 = vpop.f32.mrb[5].mxu1 }
 0x258   : > { %v935_v62 = vpop.f32.mrb[6].mxu0 }
 0x259   : > { %v2653_v63 = vpop.f32.mrb[7].mxu0  ;;  %v940_v1 = vsel %vm939_vm2, %v935_v62, -inf }
 0x25a   : > { %941 = vmax.xlane.f32.xlu0 %v940_v1 }
 0x2cc   : > { %v1098_v2 = vpop.f32.mrb[8].mxu0 }
 0x2cd   : > { %v2663_v6 = vpop.f32.mrb[9].mxu0  ;;  %v1102_v7 = vsel %vm939_vm2, %v1098_v2, -inf }
 0x2ce   : > { %1103 = vmax.xlane.f32.xlu1 %v1102_v7 }
 0x2d0   : > { %v1263_v3 = vpop.f32.mrb[10].mxu0 }
 0x2d1   : > { %v2673_v8 = vpop.f32.mrb[11].mxu0  ;;  %v1267_v9 = vsel %vm939_vm2, %v1263_v3, -inf }
 0x2d2   : > { %1268 = vmax.xlane.f32.xlu0 %v1267_v9 }
 0x2d4   : > { %v1425_v10 = vpop.f32.mrb[12].mxu0 }
 0x2d5   : > { %v2683_v11 = vpop.f32.mrb[13].mxu0  ;;  %v1429_v12 = vsel %vm939_vm2, %v1425_v10, -inf }
 0x2d6   : > { %1430 = vmax.xlane.f32.xlu0 %v1429_v12 }
 0x2d8   : > { %v1590_v13 = vpop.f32.mrb[14].mxu0 }
 0x2d9   : > { %v2693_v14 = vpop.f32.mrb[15].mxu0  ;;  %v1594_v15 = vsel %vm939_vm2, %v1590_v13, -inf }
 0x2da   : > { %1595 = vmax.xlane.f32.xlu1 %v1594_v15 }
 0x2dc   : > { %v1752_v16 = vpop.f32.mrb[16].mxu0 }
 0x2dd   : > { %v2703_v17 = vpop.f32.mrb[17].mxu0  ;;  %v1756_v18 = vsel %vm939_vm2, %v1752_v16, -inf }
 0x2de   : > { %1757 = vmax.xlane.f32.xlu0 %v1756_v18 }
 0x2e0   : > { %v1917_v19 = vpop.f32.mrb[18].mxu0 }
 0x2e1   : > { %v2713_v20 = vpop.f32.mrb[19].mxu0  ;;  %v1921_v21 = vsel %vm939_vm2, %v1917_v19, -inf }
 0x2e2   : > { %1922 = vmax.xlane.f32.xlu1 %v1921_v21 }
 0x2e4   : > { %v2079_v22 = vpop.f32.mrb[20].mxu0 }
 0x2e5   : > { %v2723_v23 = vpop.f32.mrb[21].mxu0  ;;  %v2083_v24 = vsel %vm939_vm2, %v2079_v22, -inf }
 0x2e6   : > { %2084 = vmax.xlane.f32.xlu0 %v2083_v24 }
 0x2e7   : > { %v942_v25 = vpop.xlane.xlu0 %941 }
 0x2e8   : > { %v943_v26 = vsub.f32 %v935_v62, %v942_v25 }
 0x2ea   : > { %v944_v27 = vmul.f32 1.442695, %v943_v26 }
 0x2ec   : > { %3069 = vpow2.f32 %v944_v27 }
 0x2f3   : > { %1114 = vrot.lane.b32.xlu1 %v3528_v4, %s3268_s21 }
 0x2f6   : > { %v3070_v28 = vpop.eup %3069 }
 0x2f7   : > { %v946_v29 = vsel %vm939_vm2, %v3070_v28, 0.0 }
 0x317   : > { %947 = vadd.xlane.f32.xlu1 %v946_v29 }
 0x35b   : > { %v1104_v32 = vpop.xlane.xlu1 %1103 }
 0x35c   : > { %v1105_v33 = vsub.f32 %v1098_v2, %v1104_v32 }
 0x35e   : > { %v1106_v34 = vmul.f32 1.442695, %v1105_v33  ;;  %v2208_v33 = vld [vmem:[#allocation7 + $0x88] sm:$0xff] }
 0x35f   : > { %v1269_v35 = vpop.xlane.xlu0 %1268 }
 0x360   : > { %3071 = vpow2.f32 %v1106_v34  ;;  %v1270_v36 = vsub.f32 %v1263_v3, %v1269_v35  ;;  %v2191_v34 = vld [vmem:[#allocation7] sm:$0xff] }
 0x362   : > { %v1271_v37 = vmul.f32 1.442695, %v1270_v36  ;;  %v2192_v36 = vld [vmem:[#allocation7 + $0x8] sm:$0xff] }
 0x363   : > { %v1431_v4 = vpop.xlane.xlu0 %1430 }
 0x364   : > { %3073 = vpow2.f32 %v1271_v37  ;;  %v1432_v38 = vsub.f32 %v1425_v10, %v1431_v4  ;;  %v2209_v37 = vld [vmem:[#allocation7 + $0x90] sm:$0xff]  ;;  %v2210_v4 = vld [vmem:[#allocation7 + $0x98] sm:$0xff] }
 0x366   : > { %v1433_v39 = vmul.f32 1.442695, %v1432_v38  ;;  %v2923_v38 = vpack.c.bf16 %v2192_v36, %v2191_v34  ;;  %v2222_v34 = vld [vmem:[#allocation7 + $0xf8] sm:$0xff] }
 0x367   : > { %v1596_v40 = vpop.xlane.xlu1 %1595 }
 0x368   : > { %3075 = vpow2.f32 %v1433_v39  ;;  %v1597_v41 = vsub.f32 %v1590_v13, %v1596_v40  ;;  %v2925_v39 = vpack.c.bf16 %v2210_v4, %v2209_v37  ;;  %v2193_v40 = vld [vmem:[#allocation7 + $0x10] sm:$0xff]  ;;  %v2246_v4 = vld [vmem:[#allocation7 + $0x1b8] sm:$0xff] }
 0x36a   : > { %v3072_v43 = vpop.eup %3071  ;;  %v1598_v44 = vmul.f32 1.442695, %v1597_v41  ;;  %v2194_v41 = vld [vmem:[#allocation7 + $0x18] sm:$0xff] }
 0x36b   : > { %v1758_v45 = vpop.xlane.xlu0 %1757  ;;  %v1108_v46 = vsel %vm939_vm2, %v3072_v43, 0.0 }
 0x36c   : > { %3077 = vpow2.f32 %v1598_v44  ;;  %v1759_v47 = vsub.f32 %v1752_v16, %v1758_v45  ;;  %1109 = vadd.xlane.f32.xlu0 %v1108_v46  ;;  %v2212_v44 = vld [vmem:[#allocation7 + $0xa8] sm:$0xff]  ;;  %v2195_v46 = vld [vmem:[#allocation7 + $0x20] sm:$0xff] }
 0x36e   : > { %v3074_v48 = vpop.eup %3073  ;;  %v1760_v49 = vmul.f32 1.442695, %v1759_v47  ;;  %v2196_v47 = vld [vmem:[#allocation7 + $0x28] sm:$0xff] }
 0x36f   : > { %v1923_v50 = vpop.xlane.xlu1 %1922  ;;  %v1273_v51 = vsel %vm939_vm2, %v3074_v48, 0.0 }
 0x370   : > { %3079 = vpow2.f32 %v1760_v49  ;;  %v1924_v52 = vsub.f32 %v1917_v19, %v1923_v50  ;;  %1274 = vadd.xlane.f32.xlu1 %v1273_v51  ;;  %v2214_v49 = vld [vmem:[#allocation7 + $0xb8] sm:$0xff]  ;;  %v2239_v50 = vld [vmem:[#allocation7 + $0x180] sm:$0xff]  ;;  %v2240_v51 = vld [vmem:[#allocation7 + $0x188] sm:$0xff] }
 0x372   : > { %v3076_v53 = vpop.eup %3075  ;;  %v1925_v54 = vmul.f32 1.442695, %v1924_v52  ;;  %v2953_v52 = vpack.c.bf16 %v2240_v51, %v2239_v50  ;;  %v2249_v51 = vld [vmem:[#allocation7 + $0x1d0] sm:$0xff] }
 0x373   : > { %v2085_v55 = vpop.xlane.xlu0 %2084  ;;  %v1435_v56 = vsel %vm939_vm2, %v3076_v53, 0.0  ;;  %v1115_v6 = vpop.permute.xlu1 %1114 }
 0x374   : > { %3081 = vpow2.f32 %v1925_v54  ;;  %v2086_v57 = vsub.f32 %v2079_v22, %v2085_v55  ;;  %1436 = vadd.xlane.f32.xlu0 %v1435_v56  ;;  %v2224_v54 = vld [vmem:[#allocation7 + $0x108] sm:$0xff]  ;;  %v2931_v56 = vpack.c.bf16 %v2196_v47, %v2195_v46 }
 0x375   : > { %v2248_v46 = vld [vmem:[#allocation7 + $0x1c8] sm:$0xff] }
 0x376   : > { %v3078_v58 = vpop.eup %3077  ;;  %v2087_v59 = vmul.f32 1.442695, %v2086_v57  ;;  %v2197_v57 = vld [vmem:[#allocation7 + $0x30] sm:$0xff] }
 0x377   : > { %v1600_v42 = vsel %vm939_vm2, %v3078_v58, 0.0 }
 0x378   : > { %3083 = vpow2.f32 %v2087_v59  ;;  %1601 = vadd.xlane.f32.xlu1 %v1600_v42  ;;  %v2241_v59 = vld [vmem:[#allocation7 + $0x190] sm:$0xff] }
 0x37a   : > { %v3080_v60 = vpop.eup %3079 }
 0x37b   : > { %v1762_v61 = vsel %vm939_vm2, %v3080_v60, 0.0 }
 0x37c   : > { %1763 = vadd.xlane.f32.xlu0 %v1762_v61  ;;  %v2198_v61 = vld [vmem:[#allocation7 + $0x38] sm:$0xff] }
 0x37e   : > { %v3596_v62 = vpop.eup %3081 }
 0x37f   : > { %v1927_v63 = vsel %vm939_vm2, %v3596_v62, 0.0 }
 0x380   : > { %1928 = vadd.xlane.f32.xlu1 %v1927_v63  ;;  %v2242_v63 = vld [vmem:[#allocation7 + $0x198] sm:$0xff] }
 0x382   : > { %v3600_v1 = vpop.eup %3083 }
 0x383   : > { %v2089_v2 = vsel %vm939_vm2, %v3600_v1, 0.0 }
 0x384   : > { %2090 = vadd.xlane.f32.xlu0 %v2089_v2  ;;  %v2957_v2 = vpack.c.bf16 %v2242_v63, %v2241_v59 }
 0x391   : > { %1768 = vrot.lane.b32.xlu1 %v3587_v30, %s3268_s21 }
 0x395   : > { %2095 = vrot.lane.b32.xlu1 %v3589_v31, %s3268_s21 }
 0x39a   : > { %1441 = vrot.lane.b32.xlu0 %v3530_v5, %s3268_s21 }
 0x3a4   : > { %v948_v7 = vpop.xlane.xlu1 %947 }
 0x3a5   : > { %3085 = vrcp.f32 %v948_v7  ;;  %v2226_v7 = vld [vmem:[#allocation7 + $0x118] sm:$0xff] }
 0x3af   : > { %v3086_v3 = vpop.eup %3085 }
 0x3b0   : > { %v950_v8 = vmul.f32 %v3086_v3, %v3070_v28 }
 0x3b2   : > { %2657 = vmatmul.mubr.msk.f32.vlgmr.msra.gmra.mrb[6].mxu1 %vm939_vm2, %v950_v8  ;;  %v2243_v8 = vld [vmem:[#allocation7 + $0x1a0] sm:$0xff] }
 0x3b3   : > { %2665 = vmatpush3.msra.mxu1 %v1115_v6  ;;  %2666 = vmatprep.mubr.msk.f32.mxu1 %vm3267_vm0, %v3266_v0  ;;  %v2225_v6 = vld [vmem:[#allocation7 + $0x110] sm:$0xff] }
 0x3b4   : > { %2674 = vmatprep.subr.mxu1 %v3266_v0  ;;  %v2959_v3 = vpack.c.bf16 %v2226_v7, %v2225_v6  ;;  %v2253_v7 = vld [vmem:[#allocation7 + $0x1f0] sm:$0xff] }
 0x3f9   : > { %v1110_v9 = vpop.xlane.xlu0 %1109 }
 0x3fa   : > { %3087 = vrcp.f32 %v1110_v9  ;;  %v2244_v9 = vld [vmem:[#allocation7 + $0x1a8] sm:$0xff] }
 0x3fd   : > { %v1275_v10 = vpop.xlane.xlu1 %1274 }
 0x3fe   : > { %3089 = vrcp.f32 %v1275_v10  ;;  %v2935_v10 = vpack.c.bf16 %v2198_v61, %v2197_v57  ;;  %v2251_v57 = vld [vmem:[#allocation7 + $0x1e0] sm:$0xff]  ;;  %v2236_v61 = vld [vmem:[#allocation7 + $0x168] sm:$0xff] }
 0x401   : > { %v1437_v13 = vpop.xlane.xlu0 %1436 }
 0x402   : > { %3091 = vrcp.f32 %v1437_v13 }
 0x404   : > { %v3088_v11 = vpop.eup %3087 }
 0x405   : > { %v1112_v12 = vmul.f32 %v3088_v11, %v3072_v43  ;;  %v1602_v16 = vpop.xlane.xlu1 %1601  ;;  %v2211_v43 = vld [vmem:[#allocation7 + $0xa0] sm:$0xff]  ;;  %v2961_v11 = vpack.c.bf16 %v2244_v9, %v2243_v8 }
 0x406   : > { %3093 = vrcp.f32 %v1602_v16  ;;  %v2929_v45 = vpack.c.bf16 %v2212_v44, %v2211_v43  ;;  %v2228_v16 = vld [vmem:[#allocation7 + $0x128] sm:$0xff]  ;;  %v2229_v43 = vld [vmem:[#allocation7 + $0x130] sm:$0xff]  ;;  %v2230_v44 = vld [vmem:[#allocation7 + $0x138] sm:$0xff] }
 0x407   : > { %2667 = vmatmul.mubr.msk.f32.vlgmr.msra.gmra.mrb[8].mxu1 %vm939_vm2, %v1112_v12  ;;  %v2227_v12 = vld [vmem:[#allocation7 + $0x120] sm:$0xff] }
 0x408   : > { %v3090_v14 = vpop.eup %3089  ;;  %2675 = vmatpush3.msra.mxu1 %v3530_v5  ;;  %2676 = vmatprep.mubr.msk.f32.mxu1 %vm3267_vm0, %v3266_v0 }
 0x409   : > { %v1277_v15 = vmul.f32 %v3090_v14, %v3074_v48  ;;  %2684 = vmatprep.subr.mxu1 %v3266_v0  ;;  %v1764_v17 = vpop.xlane.xlu0 %1763  ;;  %v2213_v48 = vld [vmem:[#allocation7 + $0xb0] sm:$0xff]  ;;  %v2199_v14 = vld [vmem:[#allocation7 + $0x40] sm:$0xff] }
 0x40a   : > { %3095 = vrcp.f32 %v1764_v17  ;;  %v2217_v17 = vld [vmem:[#allocation7 + $0xd0] sm:$0xff] }
 0x40b   : > { %2677 = vmatmul.mubr.msk.f32.vlgmr.msra.gmra.mrb[10].mxu1 %vm939_vm2, %v1277_v15  ;;  %v2200_v15 = vld [vmem:[#allocation7 + $0x48] sm:$0xff] }
 0x40c   : > { %2686 = vmatprep.mubr.msk.f32.mxu1 %vm3267_vm0, %v3266_v0  ;;  %v3092_v20 = vpop.eup %3091 }
 0x40d   : > { %v1929_v18 = vpop.xlane.xlu1 %1928  ;;  %v1439_v5 = vmul.f32 %v3092_v20, %v3076_v53  ;;  %v2223_v53 = vld [vmem:[#allocation7 + $0x100] sm:$0xff]  ;;  %v2939_v20 = vpack.c.bf16 %v2200_v15, %v2199_v14 }
 0x40e   : > { %3097 = vrcp.f32 %v1929_v18  ;;  %v2218_v18 = vld [vmem:[#allocation7 + $0xd8] sm:$0xff] }
 0x410   : > { %v3094_v22 = vpop.eup %3093 }
 0x411   : > { %v2091_v19 = vpop.xlane.xlu0 %2090  ;;  %v1604_v23 = vmul.f32 %v3094_v22, %v3078_v58  ;;  %v1769_v25 = vpop.permute.xlu1 %1768  ;;  %v2955_v58 = vpack.c.bf16 %v2224_v54, %v2223_v53  ;;  %v2202_v22 = vld [vmem:[#allocation7 + $0x58] sm:$0xff]  ;;  %v2233_v53 = vld [vmem:[#allocation7 + $0x150] sm:$0xff] }
 0x412   : > { %3099 = vrcp.f32 %v2091_v19  ;;  %v2963_v19 = vpack.c.bf16 %v2228_v16, %v2227_v12 }
 0x414   : > { %v3096_v24 = vpop.eup %3095 }
 0x415   : > { %v1442_v21 = vpop.permute.xlu0 %1441  ;;  %v1766_v26 = vmul.f32 %v3096_v24, %v3080_v60  ;;  %v2933_v60 = vpack.c.bf16 %v2214_v49, %v2213_v48  ;;  %v2220_v24 = vld [vmem:[#allocation7 + $0xe8] sm:$0xff]  ;;  %v2231_v48 = vld [vmem:[#allocation7 + $0x140] sm:$0xff] }
 0x416   : > { %2685 = vmatpush3.msra.mxu1 %v1442_v21  ;;  %v2201_v21 = vld [vmem:[#allocation7 + $0x50] sm:$0xff]  ;;  %v2232_v49 = vld [vmem:[#allocation7 + $0x148] sm:$0xff] }
 0x417   : > { %2687 = vmatmul.mubr.msk.f32.vlgmr.msra.gmra.mrb[12].mxu1 %vm939_vm2, %v1439_v5  ;;  %2694 = vmatprep.subr.mxu1 %v3266_v0  ;;  %v2941_v5 = vpack.c.bf16 %v2218_v18, %v2217_v17  ;;  %v2971_v50 = vpack.c.bf16 %v2232_v49, %v2231_v48 }
 0x418   : > { %2695 = vmatpush3.msra.mxu1 %v3587_v30  ;;  %2696 = vmatprep.mubr.msk.f32.mxu1 %vm3267_vm0, %v3266_v0  ;;  %v3098_v27 = vpop.eup %3097  ;;  %v2096_v30 = vpop.permute.xlu1 %2095 }
 0x419   : > { %2704 = vmatprep.subr.mxu1 %v3266_v0  ;;  %v1931_v28 = vmul.f32 %v3098_v27, %v3596_v62  ;;  %v2215_v62 = vld [vmem:[#allocation7 + $0xc0] sm:$0xff] }
 0x41a   : > { %v2203_v27 = vld [vmem:[#allocation7 + $0x60] sm:$0xff] }
 0x41b   : > { %2697 = vmatmul.mubr.msk.f32.vlgmr.msra.gmra.mrb[14].mxu1 %vm939_vm2, %v1604_v23  ;;  %v2219_v23 = vld [vmem:[#allocation7 + $0xe0] sm:$0xff] }
 0x41c   : > { %2705 = vmatpush3.msra.mxu1 %v1769_v25  ;;  %2706 = vmatprep.mubr.msk.f32.mxu1 %vm3267_vm0, %v3266_v0  ;;  %v3100_v29 = vpop.eup %3099  ;;  %v2943_v25 = vpack.c.bf16 %v2202_v22, %v2201_v21 }
 0x41d   : > { %2714 = vmatprep.subr.mxu1 %v3266_v0  ;;  %v2093_v32 = vmul.f32 %v3100_v29, %v3600_v1  ;;  %v2216_v1 = vld [vmem:[#allocation7 + $0xc8] sm:$0xff] }
 0x41e   : > { %v2937_v13 = vpack.c.bf16 %v2216_v1, %v2215_v62 }
 0x41f   : > { %2707 = vmatmul.mubr.msk.f32.vlgmr.msra.gmra.mrb[16].mxu1 %vm939_vm2, %v1766_v26  ;;  %v2945_v26 = vpack.c.bf16 %v2220_v24, %v2219_v23 }
 0x420   : > { %2715 = vmatpush3.msra.mxu1 %v3589_v31  ;;  %2716 = vmatprep.mubr.msk.f32.mxu1 %vm3267_vm0, %v3266_v0  ;;  %v2207_v31 = vld [vmem:[#allocation7 + $0x80] sm:$0xff] }
 0x421   : > { %2724 = vmatprep.subr.mxu1 %v3266_v0  ;;  %v2921_v35 = vpack.c.bf16 %v2208_v33, %v2207_v31  ;;  %v2221_v33 = vld [vmem:[#allocation7 + $0xf0] sm:$0xff] }
 0x422   : > { %v2949_v37 = vpack.c.bf16 %v2222_v34, %v2221_v33 }
 0x423   : > { %2717 = vmatmul.mubr.msk.f32.vlgmr.msra.gmra.mrb[18].mxu1 %vm939_vm2, %v1931_v28  ;;  %2922 = vmatprep.subr.bf16.mxu0 %v2921_v35  ;;  %v2204_v28 = vld [vmem:[#allocation7 + $0x68] sm:$0xff]  ;;  %v2245_v35 = vld [vmem:[#allocation7 + $0x1b0] sm:$0xff] }
 0x424   : > { %2725 = vmatpush3.msra.mxu1 %v2096_v30  ;;  %2726 = vmatprep.mubr.msk.f32.mxu1 %vm3267_vm0, %v3266_v0  ;;  %v2927_v0 = vpack.c.bf16 %v2194_v41, %v2193_v40  ;;  %v2947_v29 = vpack.c.bf16 %v2204_v28, %v2203_v27  ;;  %v2965_v40 = vpack.c.bf16 %v2246_v4, %v2245_v35 }
 0x425   : > { %2924 = vmatpush3.bf16.msra.mxu0 %v2923_v38  ;;  %2954 = vmatprep.subr.bf16.mxu1 %v2953_v52  ;;  %v2205_v38 = vld [vmem:[#allocation7 + $0x70] sm:$0xff]  ;;  %v2250_v52 = vld [vmem:[#allocation7 + $0x1d8] sm:$0xff] }
 0x426   : > { %2926 = vmatprep.subr.bf16.mxu0 %v2925_v39  ;;  %v2206_v39 = vld [vmem:[#allocation7 + $0x78] sm:$0xff]  ;;  %v2973_v54 = vpack.c.bf16 %v2250_v52, %v2249_v51 }
 0x427   : > { %2727 = vmatmul.mubr.msk.f32.vlgmr.msra.gmra.mrb[20].mxu1 %vm939_vm2, %v2093_v32  ;;  %v2951_v41 = vpack.c.bf16 %v2206_v39, %v2205_v38 }
 0x428   : > { %2956 = vmatpush3.bf16.msra.mxu1 %v2955_v58  ;;  %v2252_v58 = vld [vmem:[#allocation7 + $0x1e8] sm:$0xff] }
 0x429   : > { %2928 = vmatpush3.bf16.msra.mxu0 %v2927_v0  ;;  %2958 = vmatprep.subr.bf16.mxu1 %v2957_v2  ;;  %v2967_v0 = vpack.c.bf16 %v2230_v44, %v2229_v43 }
 0x42a   : > { %2930 = vmatprep.subr.bf16.mxu0 %v2929_v45  ;;  %v2247_v45 = vld [vmem:[#allocation7 + $0x1c0] sm:$0xff] }
 0x42b   : > { %v2969_v47 = vpack.c.bf16 %v2248_v46, %v2247_v45 }
 0x42c   : > { %2960 = vmatpush3.bf16.msra.mxu1 %v2959_v3  ;;  %v2254_v3 = vld [vmem:[#allocation7 + $0x1f8] sm:$0xff] }
 0x42d   : > { %2932 = vmatpush3.bf16.msra.mxu0 %v2931_v56  ;;  %2962 = vmatprep.subr.bf16.mxu1 %v2961_v11  ;;  %v2234_v56 = vld [vmem:[#allocation7 + $0x158] sm:$0xff]  ;;  %v2981_v9 = vpack.c.bf16 %v2254_v3, %v2253_v7 }
 0x42e   : > { %2934 = vmatprep.subr.bf16.mxu0 %v2933_v60  ;;  %v2975_v59 = vpack.c.bf16 %v2234_v56, %v2233_v53  ;;  %v2235_v60 = vld [vmem:[#allocation7 + $0x160] sm:$0xff]  ;;  %v2238_v11 = vld [vmem:[#allocation7 + $0x178] sm:$0xff] }
 0x42f   : > { %v2979_v2 = vpack.c.bf16 %v2236_v61, %v2235_v60 }
 0x430   : > { %2964 = vmatpush3.bf16.msra.mxu1 %v2963_v19 }
 0x431   : > { %2936 = vmatpush3.bf16.msra.mxu0 %v2935_v10  ;;  %2966 = vmatprep.subr.bf16.mxu1 %v2965_v40  ;;  %v2237_v10 = vld [vmem:[#allocation7 + $0x170] sm:$0xff] }
 0x432   : > { %2938 = vmatprep.subr.bf16.mxu0 %v2937_v13  ;;  %v2983_v12 = vpack.c.bf16 %v2238_v11, %v2237_v10 }
 0x434   : > { %2968 = vmatpush3.bf16.msra.mxu1 %v2967_v0 }
 0x435   : > { %2940 = vmatpush3.bf16.msra.mxu0 %v2939_v20  ;;  %2970 = vmatprep.subr.bf16.mxu1 %v2969_v47 }
 0x436   : > { %2942 = vmatprep.subr.bf16.mxu0 %v2941_v5 }
 0x438   : > { %2972 = vmatpush3.bf16.msra.mxu1 %v2971_v50 }
 0x439   : > { %2944 = vmatpush3.bf16.msra.mxu0 %v2943_v25  ;;  %2974 = vmatprep.subr.bf16.mxu1 %v2973_v54 }
 0x43a   : > { %2946 = vmatprep.subr.bf16.mxu0 %v2945_v26 }
 0x43c   : > { %2976 = vmatpush3.bf16.msra.mxu1 %v2975_v59 }
 0x43d   : > { %2948 = vmatpush3.bf16.msra.mxu0 %v2947_v29 }
 0x43e   : > { %2950 = vmatprep.subr.bf16.mxu0 %v2949_v37 }
 0x441   : > { %2952 = vmatpush3.bf16.msra.mxu0 %v2951_v41 }
 0x485   : > { %v3643_v55 = vpop.f32.mrb[6].mxu1 }
 0x486   : > { %v2658_v42 = vpop.f32.mrb[7].mxu1 }
 0x487   : > { %v2977_v42 = vpack.c.bf16 %v2252_v58, %v2251_v57 }
 0x489   : > { %2978 = vmatprep.subr.bf16.mxu1 %v2977_v42 }
 0x48a   : > { %2980 = vmatpush3.bf16.msra.mxu1 %v2979_v2 }
 0x48b   : > { %2982 = vmatprep.subr.bf16.mxu1 %v2981_v9 }
 0x48e   : > { %2984 = vmatpush3.bf16.msra.mxu1 %v2983_v12 }
 0x4da   : > { %v1186_v30 = vpop.f32.mrb[8].mxu1 }
 0x4db   : > { %v2668_v32 = vpop.f32.mrb[9].mxu1 }
 0x4de   : > { %v3645_v31 = vpop.f32.mrb[10].mxu1 }
 0x4df   : > { %v2678_v36 = vpop.f32.mrb[11].mxu1 }
 0x4ea   : > { %v1513_v62 = vpop.f32.mrb[12].mxu1 }
 0x4eb   : > { %v3059_v63 = vpack.i.bf16 %v1186_v30, %v1513_v62  ;;  %v2688_v1 = vpop.f32.mrb[13].mxu1 }
 0x4ed   : > { %3060 = vrot.lane.b32.xlu0 %v3059_v63, %s3268_s21 }
 0x4ee   : > { %v1674_v6 = vpop.f32.mrb[14].mxu1 }
 0x4ef   : > { %v2698_v8 = vpop.f32.mrb[15].mxu1 }
 0x4f2   : > { %v1840_v13 = vpop.f32.mrb[16].mxu1 }
 0x4f3   : > { %v2708_v14 = vpop.f32.mrb[17].mxu1 }
 0x4f6   : > { %v2001_v15 = vpop.f32.mrb[18].mxu1 }
 0x4f7   : > { %v2718_v16 = vpop.f32.mrb[19].mxu1 }
 0x4fa   : > { %v2167_v17 = vpop.f32.mrb[20].mxu1 }
 0x4fb   : > { %v3064_v18 = vpack.i.bf16 %v1840_v13, %v2167_v17  ;;  %v2728_v19 = vpop.f32.mrb[21].mxu1 }
 0x4fd   : > { %3065 = vrot.lane.b32.xlu1 %v3064_v18, %s3268_s21 }
 0x55f   : > { %v3061_v20 = vpop.permute.xlu0 %3060 }
 0x560   : > { %v3063_v5 = vunpack.i.h.bf16 %v3061_v20  ;;  %v3062_v21 = vunpack.i.l.bf16 %v3061_v20 }
 0x562   : > { %v2188_v22 = vsel %vm862_vm1, %v3645_v31, %v3062_v21  ;;  %v2187_v23 = vsel %vm862_vm1, %v3643_v55, %v3063_v5  ;;  %v2542_v55 = vld [vmem:[%s3711_s3] ss:$0 sm:$0xff] }
 0x563   : > { %2326 = vmatprep.mubr.f32.mxu0 %v2188_v22 }
 0x564   : > { %2327 = vmatmul.mubr.f32.vlgmr.msra.gmra.mrb[22].mxu0 %v2187_v23 }
 0x56f   : > { %v3066_v24 = vpop.permute.xlu1 %3065 }
 0x570   : > { %v3068_v25 = vunpack.i.h.bf16 %v3066_v24  ;;  %v3067_v26 = vunpack.i.l.bf16 %v3066_v24 }
 0x572   : > { %v2190_v27 = vsel %vm862_vm1, %v2001_v15, %v3067_v26  ;;  %v2189_v28 = vsel %vm862_vm1, %v1674_v6, %v3068_v25 }
 0x573   : > { %2396 = vmatprep.mubr.f32.mxu1 %v2190_v27 }
 0x574   : > { %2397 = vmatmul.mubr.f32.vlgmr.msra.gmra.mrb[22].mxu1 %v2189_v28 }
 0x637   : > { %v2611_v29 = vpop.f32.mrb[22].mxu0 }
 0x638   : > { %v2612_v30 = vpop.f32.mrb[23].mxu0 }
 0x639   : > { %v2613_v32 = vadd.f32 %v2612_v30, %v2611_v29 }
 0x63b   : > { %v2329_v34 = vadd.f32 %v2613_v32, %v2542_v55 }
 0x647   : > { %v2646_v31 = vpop.f32.mrb[22].mxu1 }
 0x648   : > { %v2647_v33 = vpop.f32.mrb[23].mxu1 }
 0x649   : > { %v2648_v35 = vadd.f32 %v2647_v33, %v2646_v31 }
 0x64b   : > { %v2399_v36 = vadd.f32 %v2648_v35, %v2329_v34 }
 0x64d   : > { %2402 = vst [vmem:[%s241_s25] sm:$0xff] %v2399_v36 }
 0x64e   : > { %3200 = shalt.err (!%p3197_p2)
}
 0x64f   : > { %s3201_s5 = scalar_lea.hbm %s3664_s24, 128  ;;  %s3205_s10 = scalar_lea.hbm %s3712_s4, 256 }
 0x650   : > { %p3202_p13 = scmp.ne.s32.totalorder %s3664_s24, %s3201_s5  ;;  %p3206_p4 = scmp.lt.u32.totalorder %s3664_s24, %s3712_s4 }
 0x651   : > { %p3207_p7 = scmp.lt.u32.totalorder %s3205_s10, %s3201_s5  ;;  %p3209_p11 = scmp.lt.u32.totalorder %s3201_s5, %s3664_s24 }
 0x652   : > { %p3203_p6 = pnand %p3202_p13, %p3726_p0 }
 0x653   : > { %p3208_p8 = por %p3207_p7, %p3206_p4 }
 0x654   : > { %p3204_p10 = pneg %p3203_p6 }
 0x655   : > { %p3210_p1 = por %p3209_p11, %p3208_p8 }
 0x657   : > { %p3211_p3 = pnand %p3210_p1, %p3204_p10 }
 0x659   : > { %3214 = shalt.err (!%p3211_p3)
}
 0x65a   : > { %2995 = dma.vmem_to_hbm [thread:$0]  (%p3726_p0), %s3666_s7, 128, %s3664_s24, %s2404_s26  }
 0x65b PF: > { %s2429_s30 = sand.u32 1, %s3245_s15   ;;  %p3727_p5 = scmp.ne.s32.totalorder %s3717_s22, 0 }
 0x65c   : > { %p3728_p9 = scmp.ge.s32.totalorder %s3257_s18, 2  ;;  %s2430_s6 = scalar_lea.sflag [#allocation4], %s2429_s30 }
 0x65e   : > { %p3009_p12 = pnand %p3728_p9, %p3727_p5 }
 0x660   : > { %3240 = dma.done.wait (!%p3009_p12), %s2430_s6, 128  }
 0x661   : > { %3242 = vsyncadd (!%p3009_p12), %s2430_s6, 4294967168  ;;  %p18_p2 = scmp.ge.s32.totalorder %s3405_s11, 4   ;;  %s3729_s15 = smov %s3249_s16 }
 0x662   : > { %s3730_s16 = smov %s3253_s17  ;;  %s3731_s17 = smov %s3414_s14 }
 0x663   : > { %s3732_s18 = smov %s3405_s11  ;;  %20 = sbr.rel (!%p18_p2) target bundleno = 6 (0x6), region = 89 }
 0x66a   :  { %2435 = vsyncpa [#allocation3], 1 }
 0x66b   :  { %2437 = vsyncpa [#allocation3 + $0x1], 1 }
 0x66c   :  { %2438 = vsyncpa [#allocation6], 1 }
 0x66d   :  { %2439 = vsyncpa [#allocation4], 1 }
 0x66e   :  { %2441 = vsyncpa [#allocation4 + $0x1], 1 }

</bundles_post_ra>
